<compile_context>
chip_gen: v5e
topology: v5e:2x2
jax: 0.10.0
libtpu: 0.0.40
codegen_flags: <defaults>
</compile_context>

<pallas_src>
import functools
import math

import numpy as np

import jax
import jax.numpy as jnp
from jax.experimental import pallas as pl
from jax.experimental.pallas import tpu as pltpu


def _round_up(x, m):
  return (x + m - 1) // m * m


def _cdiv(a, b):
  return -(-a // b)


def _vmem_capacity_bytes():
  try:
    return int(pltpu.get_tpu_info().vmem_capacity_bytes)
  except Exception:  # pragma: no cover - conservative fallback
    return 64 * 1024 * 1024  # v7x per-core VMEM (smallest current part)


def _vmem_model(T, T_out, C_in, KC, C_outp, compute_dtype, out_dtype):
  """Approximate VMEM bytes: (per (n,v)-row cost, constant cost)."""
  cb = np.dtype(compute_dtype).itemsize
  ob = np.dtype(out_dtype).itemsize
  sub_c = max(1, 32 // cb)   # sublane tile rows (8 for f32, 16 for bf16)
  sub_o = max(1, 32 // ob)
  lanes = lambda n: _round_up(max(int(n), 1), 128)
  per_row = (2 * _round_up(T, sub_c) * lanes(C_in) * cb        # x block, double-buffered
             + 2 * _round_up(T_out, sub_o) * lanes(C_outp) * ob  # out block, double-buffered
             + _round_up(T_out, sub_c) * lanes(KC) * cb)         # im2col scratch (single)
  const = (2 * _round_up(KC, sub_c) * lanes(C_outp) * cb         # folded weights
           + 2 * 8 * lanes(C_outp) * 4                           # shift
           + (1 << 20))                                          # Mosaic internal slack
  return per_row, const


def _choose_blocking(nv, per_row, const, budget):
  """VMEM-aware block rows; keep the grid even and >=4 steps for v7x balance."""
  b = max(1, min(int((budget - const) // per_row), nv, 512))
  g = _cdiv(nv, b)
  g = max(g, min(4, nv))        # >= 2 steps per TensorCore on dual-TC chips
  if g > 1 and g % 2:
    g += 1                      # even split across the 2 TCs on v7x
  b = _cdiv(nv, g)
  return b, g


def _tcn_bn_kernel(x_ref, w_ref, shift_ref, o_ref, col_ref,
                   *, K, C_in, pad, T, T_out, stride):
  # x_ref:     (B, T, C_in)          activations (compute dtype, e.g. bf16)
  # w_ref:     (K*C_in, C_outp)      BN-scale-folded conv weights (compute dtype)
  # shift_ref: (1, 1, C_outp)        fused conv-bias + BN shift (f32)
  # o_ref:     (B, T_out, C_outp)    output block (out dtype, e.g. bf16)
  # col_ref:   (B, T_out, K*C_in)    VMEM im2col scratch
  B = x_ref.shape[0]
  KC = K * C_in
  C_outp = o_ref.shape[-1]

  # Build the im2col block.  Halo (out-of-range temporal taps) entries are
  # written as zeros every step: scratch is per-core, and with a "parallel"
  # grid only one core sees program_id==0, so first-step-only init is unsafe.
  for k in range(K):
    lo = min(max(0, -(-(pad - k) // stride)), T_out)             # ceil((pad-k)/stride)
    hi = min(max(0, (T - 1 + pad - k) // stride + 1), T_out)
    lane0 = k * C_in
    if lo > 0:
      col_ref[:, 0:lo, lane0:lane0 + C_in] = jnp.zeros((B, lo, C_in), x_ref.dtype)
    if hi < T_out:
      col_ref[:, hi:T_out, lane0:lane0 + C_in] = (
          jnp.zeros((B, T_out - hi, C_in), x_ref.dtype))
    if hi > lo:
      src0 = lo * stride + k - pad
      n = hi - lo
      if stride == 1:
        col_ref[:, lo:hi, lane0:lane0 + C_in] = x_ref[:, src0:src0 + n, :]
      else:
        # strided temporal gather straight into the im2col buffer
        col_ref[:, lo:hi, lane0:lane0 + C_in] = (
            x_ref[:, pl.ds(src0, n, stride=stride), :])

  # One fused MXU matmul over the K*C_in contraction, f32 accumulate in a
  # value, fused BN/bias shift, and a single store of the output block.
  acc = jnp.dot(col_ref[...].reshape(B * T_out, KC), w_ref[...],
                preferred_element_type=jnp.float32)
  acc = acc.reshape(B, T_out, C_outp) + shift_ref[...]
  o_ref[...] = acc.astype(o_ref.dtype)


def unit_tcn_skip_forward(x_nchw, w_oikl, b_o, bn_gamma, bn_beta,
                          bn_mean, bn_var, *, stride=1, eps=1e-5,
                          compute_dtype=jnp.bfloat16, out_dtype=None,
                          block_rows=None):
  """x_nchw: (N, C_in, T, V); w_oikl: (C_out, C_in, K, 1) -> (N, C_out, T_out, V)."""
  N, C_in, T, V = x_nchw.shape
  C_out, C_in_w, K, _ = w_oikl.shape
  assert C_in_w == C_in
  out_dtype = compute_dtype if out_dtype is None else out_dtype

  pad = (K - 1) // 2                       # matches nn.Conv2d(padding=((K-1)//2, 0))
  T_out = (T + 2 * pad - K) // stride + 1
  KC = K * C_in

  # Output-channel padding policy (write-amplification vs lane-dense stores).
  if C_out < 64:
    C_outp = C_out                          # small channels: no 16x padded writeback
  else:
    C_outp = _round_up(C_out, 128)          # lane-dense vst
    if C_outp % 256 and (_round_up(C_out, 256) - C_out) * 8 <= C_out:
      C_outp = _round_up(C_out, 256)        # fill v6e/v7x 256-wide MXU when cheap

  NV = N * V

  # VMEM-aware block-row selection + even grid for v7x 2-TC balance.
  per_row, const_b = _vmem_model(T, T_out, C_in, KC, C_outp, compute_dtype, out_dtype)
  vmem_cap = _vmem_capacity_bytes()
  if block_rows is None:
    B, G = _choose_blocking(NV, per_row, const_b, vmem_cap // 2)
  else:
    B = int(block_rows)
    G = _cdiv(NV, B)
  NV_p = B * G
  vmem_limit = int(min(vmem_cap, max(2 * (const_b + per_row * B), 32 * 1024 * 1024)))

  # --- glue: layout + parameter packing (plain JAX; no activation time-pad) ---
  x = jnp.transpose(x_nchw, (0, 3, 2, 1)).reshape(NV, T, C_in)      # (NV, T, Cin)
  if NV_p != NV:
    x = jnp.pad(x, ((0, NV_p - NV), (0, 0), (0, 0)))
  x = x.astype(compute_dtype)

  scale = (bn_gamma / jnp.sqrt(bn_var + eps)).astype(jnp.float32)   # (C_out,)
  w = jnp.transpose(w_oikl[..., 0], (2, 1, 0)) * scale[None, None, :]  # (K, Cin, Cout)
  w = w.reshape(KC, C_out)
  shift = bn_beta + (b_o - bn_mean) * scale                         # (C_out,)
  if C_outp != C_out:
    w = jnp.pad(w, ((0, 0), (0, C_outp - C_out)))
    shift = jnp.pad(shift, (0, C_outp - C_out))
  w = w.astype(compute_dtype)
  shift = shift.reshape(1, 1, C_outp).astype(jnp.float32)

  kernel = functools.partial(_tcn_bn_kernel, K=K, C_in=C_in, pad=pad,
                             T=T, T_out=T_out, stride=stride)

  out = pl.pallas_call(
      kernel,
      out_shape=jax.ShapeDtypeStruct((NV_p, T_out, C_outp), out_dtype),
      grid_spec=pltpu.PrefetchScalarGridSpec(
          num_scalar_prefetch=0,
          grid=(G,),
          in_specs=[
              pl.BlockSpec((B, T, C_in), lambda i: (i, 0, 0)),
              pl.BlockSpec((KC, C_outp), lambda i: (0, 0)),
              pl.BlockSpec((1, 1, C_outp), lambda i: (0, 0, 0)),
          ],
          out_specs=pl.BlockSpec((B, T_out, C_outp), lambda i: (i, 0, 0)),
          scratch_shapes=[pltpu.VMEM((B, T_out, KC), compute_dtype)],
      ),
      compiler_params=pltpu.CompilerParams(
          dimension_semantics=("parallel",),
          vmem_limit_bytes=vmem_limit),
  )(x, w, shift)

  # strip padding, back to NCHW: (NV, T_out, Cout) -> (N, Cout, T_out, V)
  out = out[:NV, :, :C_out].reshape(N, V, T_out, C_out)
  return jnp.transpose(out, (0, 3, 2, 1))


def _reference(x_nchw, w_oikl, b_o, bn_gamma, bn_beta, bn_mean, bn_var,
               *, stride=1, eps=1e-5):
  K = w_oikl.shape[2]
  pad = (K - 1) // 2
  y = jax.lax.conv_general_dilated(
      x_nchw, w_oikl,
      window_strides=(stride, 1),
      padding=((pad, pad), (0, 0)),
      dimension_numbers=("NCHW", "OIHW", "NCHW"))
  y = y + b_o.reshape(1, -1, 1, 1)
  scale = bn_gamma / jnp.sqrt(bn_var + eps)
  shift = bn_beta - bn_mean * scale
  return y * scale.reshape(1, -1, 1, 1) + shift.reshape(1, -1, 1, 1)


if __name__ == "__main__":
  # small shapes consistent with the module: (N, C_in, T, V)
  N, C_in, C_out, T, V = 2, 4, 8, 16, 16
  K = 9

  key = jax.random.PRNGKey(0)
  kx, kw, kb, kg, kbe, km, kv = jax.random.split(key, 7)

  x = jax.random.normal(kx, (N, C_in, T, V), dtype=jnp.float32)

  # conv_init: kaiming_normal_(mode='fan_out') -> std = sqrt(2/(C_out*K*1)); bias = 0
  fan_out = C_out * K * 1
  w = jax.random.normal(kw, (C_out, C_in, K, 1), jnp.float32) * math.sqrt(2.0 / fan_out)
  b = jnp.zeros((C_out,), jnp.float32)

  # bn_init(bn, 1): gamma = 1, beta = 0; fresh running stats mean=0, var=1
  bn_gamma = jnp.ones((C_out,), jnp.float32)
  bn_beta = jnp.zeros((C_out,), jnp.float32)
  bn_mean = jnp.zeros((C_out,), jnp.float32)
  bn_var = jnp.ones((C_out,), jnp.float32)

  # bf16-representable activations/weights so the kernel (bf16 MXU, f32 acc) and
  # the f32 XLA reference see identical inputs.
  xq = x.astype(jnp.bfloat16).astype(jnp.float32)
  wq = w.astype(jnp.bfloat16).astype(jnp.float32)

  # --- test 1: module defaults (stride=1, identity BN), bf16 compute + bf16 out ---
  out1 = unit_tcn_skip_forward(xq, wq, b, bn_gamma, bn_beta, bn_mean, bn_var, stride=1)
  out1 = jax.block_until_ready(out1)
  ref1 = _reference(xq, wq, b, bn_gamma, bn_beta, bn_mean, bn_var, stride=1)
  assert out1.shape == ref1.shape == (N, C_out, T, V)
  err1 = float(jnp.max(jnp.abs(out1.astype(jnp.float32) - ref1)))
  assert err1 < 2e-2, err1   # bound set by bf16 output quantization

  # --- test 2: stride=2, nontrivial bias + BN running stats, f32 output path ---
  b2 = 0.1 * jax.random.normal(kb, (C_out,), jnp.float32)
  g2 = 1.0 + 0.1 * jax.random.normal(kg, (C_out,), jnp.float32)
  be2 = 0.1 * jax.random.normal(kbe, (C_out,), jnp.float32)
  m2 = 0.1 * jax.random.normal(km, (C_out,), jnp.float32)
  v2 = 0.7 + 0.6 * jax.random.uniform(kv, (C_out,), jnp.float32)
  out2 = unit_tcn_skip_forward(xq, wq, b2, g2, be2, m2, v2, stride=2,
                               out_dtype=jnp.float32)
  out2 = jax.block_until_ready(out2)
  ref2 = _reference(xq, wq, b2, g2, be2, m2, v2, stride=2)
  T_out2 = (T + 2 * ((K - 1) // 2) - K) // 2 + 1
  assert out2.shape == ref2.shape == (N, C_out, T_out2, V)
  err2 = float(jnp.max(jnp.abs(out2 - ref2)))
  assert err2 < 4e-2, err2   # bound set by bf16 quantization of BN-folded weights

  print("KERNEL_OK")
</pallas_src>

<mosaic_0001>
module attributes {stable_mosaic.version = 11 : i64} {
  func.func @_tcn_bn_kernel(%arg0: i32, %arg1: memref<8x16x4xbf16, #tpu.memory_space<vmem>>, %arg2: memref<36x8xbf16, #tpu.memory_space<vmem>>, %arg3: memref<1x1x8xf32, #tpu.memory_space<vmem>>, %arg4: memref<8x16x8xbf16, #tpu.memory_space<vmem>>, %arg5: memref<8x16x36xbf16, #tpu.memory_space<vmem>>) attributes {dimension_semantics = [#tpu.dimension_semantics<parallel>], iteration_bounds = array<i64: 4>, scalar_prefetch = 0 : i64, scratch_operands = 1 : i64, tpu.core_type = #tpu.core_type<tc>, window_params = [{transform_indices = @transform_0, window_bounds = array<i64: 8, 16, 4>}, {pipeline_mode = #tpu.pipeline_mode<synchronous>, transform_indices = @transform_1, window_bounds = array<i64: 36, 8>}, {pipeline_mode = #tpu.pipeline_mode<synchronous>, transform_indices = @transform_2, window_bounds = array<i64: 1, 1, 8>}, {transform_indices = @transform_3, window_bounds = array<i64: 8, 16, 8>}]} {
    %cst = arith.constant 0.000000e+00 : bf16
    %0 = vector.broadcast %cst : bf16 to vector<8x4x4xbf16>
    %c0 = arith.constant 0 : index
    %c0_0 = arith.constant 0 : index
    %c0_1 = arith.constant 0 : index
    %1 = vector.load %arg5[%c0, %c0_0, %c0_1] : memref<8x16x36xbf16, #tpu.memory_space<vmem>>, vector<8x4x4xbf16>
    tpu.vector_store %arg5[%c0, %c0_0, %c0_1], %0 {strides = array<i32>} : memref<8x16x36xbf16, #tpu.memory_space<vmem>>, vector<8x4x4xbf16>,
    %c0_2 = arith.constant 0 : index
    %c0_3 = arith.constant 0 : index
    %c0_4 = arith.constant 0 : index
    %2 = vector.load %arg1[%c0_2, %c0_3, %c0_4] : memref<8x16x4xbf16, #tpu.memory_space<vmem>>, vector<8x12x4xbf16>
    %c0_5 = arith.constant 0 : index
    %c4 = arith.constant 4 : index
    %c0_6 = arith.constant 0 : index
    %3 = vector.load %arg5[%c0_5, %c4, %c0_6] : memref<8x16x36xbf16, #tpu.memory_space<vmem>>, vector<8x12x4xbf16>
    tpu.vector_store %arg5[%c0_5, %c4, %c0_6], %2 {strides = array<i32>} : memref<8x16x36xbf16, #tpu.memory_space<vmem>>, vector<8x12x4xbf16>,
    %cst_7 = arith.constant 0.000000e+00 : bf16
    %4 = vector.broadcast %cst_7 : bf16 to vector<8x3x4xbf16>
    %c0_8 = arith.constant 0 : index
    %c0_9 = arith.constant 0 : index
    %c4_10 = arith.constant 4 : index
    %5 = vector.load %arg5[%c0_8, %c0_9, %c4_10] : memref<8x16x36xbf16, #tpu.memory_space<vmem>>, vector<8x3x4xbf16>
    tpu.vector_store %arg5[%c0_8, %c0_9, %c4_10], %4 {strides = array<i32>} : memref<8x16x36xbf16, #tpu.memory_space<vmem>>, vector<8x3x4xbf16>,
    %c0_11 = arith.constant 0 : index
    %c0_12 = arith.constant 0 : index
    %c0_13 = arith.constant 0 : index
    %6 = vector.load %arg1[%c0_11, %c0_12, %c0_13] : memref<8x16x4xbf16, #tpu.memory_space<vmem>>, vector<8x13x4xbf16>
    %c0_14 = arith.constant 0 : index
    %c3 = arith.constant 3 : index
    %c4_15 = arith.constant 4 : index
    %7 = vector.load %arg5[%c0_14, %c3, %c4_15] : memref<8x16x36xbf16, #tpu.memory_space<vmem>>, vector<8x13x4xbf16>
    tpu.vector_store %arg5[%c0_14, %c3, %c4_15], %6 {strides = array<i32>} : memref<8x16x36xbf16, #tpu.memory_space<vmem>>, vector<8x13x4xbf16>,
    %cst_16 = arith.constant 0.000000e+00 : bf16
    %8 = vector.broadcast %cst_16 : bf16 to vector<8x2x4xbf16>
    %c0_17 = arith.constant 0 : index
    %c0_18 = arith.constant 0 : index
    %c8 = arith.constant 8 : index
    %9 = vector.load %arg5[%c0_17, %c0_18, %c8] : memref<8x16x36xbf16, #tpu.memory_space<vmem>>, vector<8x2x4xbf16>
    tpu.vector_store %arg5[%c0_17, %c0_18, %c8], %8 {strides = array<i32>} : memref<8x16x36xbf16, #tpu.memory_space<vmem>>, vector<8x2x4xbf16>,
    %c0_19 = arith.constant 0 : index
    %c0_20 = arith.constant 0 : index
    %c0_21 = arith.constant 0 : index
    %10 = vector.load %arg1[%c0_19, %c0_20, %c0_21] : memref<8x16x4xbf16, #tpu.memory_space<vmem>>, vector<8x14x4xbf16>
    %c0_22 = arith.constant 0 : index
    %c2 = arith.constant 2 : index
    %c8_23 = arith.constant 8 : index
    %11 = vector.load %arg5[%c0_22, %c2, %c8_23] : memref<8x16x36xbf16, #tpu.memory_space<vmem>>, vector<8x14x4xbf16>
    tpu.vector_store %arg5[%c0_22, %c2, %c8_23], %10 {strides = array<i32>} : memref<8x16x36xbf16, #tpu.memory_space<vmem>>, vector<8x14x4xbf16>,
    %cst_24 = arith.constant 0.000000e+00 : bf16
    %12 = vector.broadcast %cst_24 : bf16 to vector<8x1x4xbf16>
    %c0_25 = arith.constant 0 : index
    %c0_26 = arith.constant 0 : index
    %c12 = arith.constant 12 : index
    %13 = vector.load %arg5[%c0_25, %c0_26, %c12] : memref<8x16x36xbf16, #tpu.memory_space<vmem>>, vector<8x1x4xbf16>
    tpu.vector_store %arg5[%c0_25, %c0_26, %c12], %12 {strides = array<i32>} : memref<8x16x36xbf16, #tpu.memory_space<vmem>>, vector<8x1x4xbf16>,
    %c0_27 = arith.constant 0 : index
    %c0_28 = arith.constant 0 : index
    %c0_29 = arith.constant 0 : index
    %14 = vector.load %arg1[%c0_27, %c0_28, %c0_29] : memref<8x16x4xbf16, #tpu.memory_space<vmem>>, vector<8x15x4xbf16>
    %c0_30 = arith.constant 0 : index
    %c1 = arith.constant 1 : index
    %c12_31 = arith.constant 12 : index
    %15 = vector.load %arg5[%c0_30, %c1, %c12_31] : memref<8x16x36xbf16, #tpu.memory_space<vmem>>, vector<8x15x4xbf16>
    tpu.vector_store %arg5[%c0_30, %c1, %c12_31], %14 {strides = array<i32>} : memref<8x16x36xbf16, #tpu.memory_space<vmem>>, vector<8x15x4xbf16>,
    %c0_32 = arith.constant 0 : index
    %c0_33 = arith.constant 0 : index
    %c0_34 = arith.constant 0 : index
    %16 = vector.load %arg1[%c0_32, %c0_33, %c0_34] : memref<8x16x4xbf16, #tpu.memory_space<vmem>>, vector<8x16x4xbf16>
    %c0_35 = arith.constant 0 : index
    %c0_36 = arith.constant 0 : index
    %c16 = arith.constant 16 : index
    %17 = vector.load %arg5[%c0_35, %c0_36, %c16] : memref<8x16x36xbf16, #tpu.memory_space<vmem>>, vector<8x16x4xbf16>
    tpu.vector_store %arg5[%c0_35, %c0_36, %c16], %16 {strides = array<i32>} : memref<8x16x36xbf16, #tpu.memory_space<vmem>>, vector<8x16x4xbf16>,
    %cst_37 = arith.constant 0.000000e+00 : bf16
    %18 = vector.broadcast %cst_37 : bf16 to vector<8x1x4xbf16>
    %c0_38 = arith.constant 0 : index
    %c15 = arith.constant 15 : index
    %c20 = arith.constant 20 : index
    %19 = vector.load %arg5[%c0_38, %c15, %c20] : memref<8x16x36xbf16, #tpu.memory_space<vmem>>, vector<8x1x4xbf16>
    tpu.vector_store %arg5[%c0_38, %c15, %c20], %18 {strides = array<i32>} : memref<8x16x36xbf16, #tpu.memory_space<vmem>>, vector<8x1x4xbf16>,
    %c0_39 = arith.constant 0 : index
    %c1_40 = arith.constant 1 : index
    %c0_41 = arith.constant 0 : index
    %20 = vector.load %arg1[%c0_39, %c1_40, %c0_41] : memref<8x16x4xbf16, #tpu.memory_space<vmem>>, vector<8x15x4xbf16>
    %c0_42 = arith.constant 0 : index
    %c0_43 = arith.constant 0 : index
    %c20_44 = arith.constant 20 : index
    %21 = vector.load %arg5[%c0_42, %c0_43, %c20_44] : memref<8x16x36xbf16, #tpu.memory_space<vmem>>, vector<8x15x4xbf16>
    tpu.vector_store %arg5[%c0_42, %c0_43, %c20_44], %20 {strides = array<i32>} : memref<8x16x36xbf16, #tpu.memory_space<vmem>>, vector<8x15x4xbf16>,
    %cst_45 = arith.constant 0.000000e+00 : bf16
    %22 = vector.broadcast %cst_45 : bf16 to vector<8x2x4xbf16>
    %c0_46 = arith.constant 0 : index
    %c14 = arith.constant 14 : index
    %c24 = arith.constant 24 : index
    %23 = vector.load %arg5[%c0_46, %c14, %c24] : memref<8x16x36xbf16, #tpu.memory_space<vmem>>, vector<8x2x4xbf16>
    tpu.vector_store %arg5[%c0_46, %c14, %c24], %22 {strides = array<i32>} : memref<8x16x36xbf16, #tpu.memory_space<vmem>>, vector<8x2x4xbf16>,
    %c0_47 = arith.constant 0 : index
    %c2_48 = arith.constant 2 : index
    %c0_49 = arith.constant 0 : index
    %24 = vector.load %arg1[%c0_47, %c2_48, %c0_49] : memref<8x16x4xbf16, #tpu.memory_space<vmem>>, vector<8x14x4xbf16>
    %c0_50 = arith.constant 0 : index
    %c0_51 = arith.constant 0 : index
    %c24_52 = arith.constant 24 : index
    %25 = vector.load %arg5[%c0_50, %c0_51, %c24_52] : memref<8x16x36xbf16, #tpu.memory_space<vmem>>, vector<8x14x4xbf16>
    tpu.vector_store %arg5[%c0_50, %c0_51, %c24_52], %24 {strides = array<i32>} : memref<8x16x36xbf16, #tpu.memory_space<vmem>>, vector<8x14x4xbf16>,
    %cst_53 = arith.constant 0.000000e+00 : bf16
    %26 = vector.broadcast %cst_53 : bf16 to vector<8x3x4xbf16>
    %c0_54 = arith.constant 0 : index
    %c13 = arith.constant 13 : index
    %c28 = arith.constant 28 : index
    %27 = vector.load %arg5[%c0_54, %c13, %c28] : memref<8x16x36xbf16, #tpu.memory_space<vmem>>, vector<8x3x4xbf16>
    tpu.vector_store %arg5[%c0_54, %c13, %c28], %26 {strides = array<i32>} : memref<8x16x36xbf16, #tpu.memory_space<vmem>>, vector<8x3x4xbf16>,
    %c0_55 = arith.constant 0 : index
    %c3_56 = arith.constant 3 : index
    %c0_57 = arith.constant 0 : index
    %28 = vector.load %arg1[%c0_55, %c3_56, %c0_57] : memref<8x16x4xbf16, #tpu.memory_space<vmem>>, vector<8x13x4xbf16>
    %c0_58 = arith.constant 0 : index
    %c0_59 = arith.constant 0 : index
    %c28_60 = arith.constant 28 : index
    %29 = vector.load %arg5[%c0_58, %c0_59, %c28_60] : memref<8x16x36xbf16, #tpu.memory_space<vmem>>, vector<8x13x4xbf16>
    tpu.vector_store %arg5[%c0_58, %c0_59, %c28_60], %28 {strides = array<i32>} : memref<8x16x36xbf16, #tpu.memory_space<vmem>>, vector<8x13x4xbf16>,
    %cst_61 = arith.constant 0.000000e+00 : bf16
    %30 = vector.broadcast %cst_61 : bf16 to vector<8x4x4xbf16>
    %c0_62 = arith.constant 0 : index
    %c12_63 = arith.constant 12 : index
    %c32 = arith.constant 32 : index
    %31 = vector.load %arg5[%c0_62, %c12_63, %c32] : memref<8x16x36xbf16, #tpu.memory_space<vmem>>, vector<8x4x4xbf16>
    tpu.vector_store %arg5[%c0_62, %c12_63, %c32], %30 {strides = array<i32>} : memref<8x16x36xbf16, #tpu.memory_space<vmem>>, vector<8x4x4xbf16>,
    %c0_64 = arith.constant 0 : index
    %c4_65 = arith.constant 4 : index
    %c0_66 = arith.constant 0 : index
    %32 = vector.load %arg1[%c0_64, %c4_65, %c0_66] : memref<8x16x4xbf16, #tpu.memory_space<vmem>>, vector<8x12x4xbf16>
    %c0_67 = arith.constant 0 : index
    %c0_68 = arith.constant 0 : index
    %c32_69 = arith.constant 32 : index
    %33 = vector.load %arg5[%c0_67, %c0_68, %c32_69] : memref<8x16x36xbf16, #tpu.memory_space<vmem>>, vector<8x12x4xbf16>
    tpu.vector_store %arg5[%c0_67, %c0_68, %c32_69], %32 {strides = array<i32>} : memref<8x16x36xbf16, #tpu.memory_space<vmem>>, vector<8x12x4xbf16>,
    %c0_70 = arith.constant 0 : index
    %c0_71 = arith.constant 0 : index
    %c0_72 = arith.constant 0 : index
    %34 = vector.load %arg5[%c0_70, %c0_71, %c0_72] : memref<8x16x36xbf16, #tpu.memory_space<vmem>>, vector<8x16x36xbf16>
    %35 = vector.shape_cast %34 : vector<8x16x36xbf16> to vector<128x36xbf16>
    %c0_73 = arith.constant 0 : index
    %c0_74 = arith.constant 0 : index
    %36 = vector.load %arg2[%c0_73, %c0_74] : memref<36x8xbf16, #tpu.memory_space<vmem>>, vector<36x8xbf16>
    %cst_75 = arith.constant dense<0.000000e+00> : vector<128x8xf32>
    %37 = tpu.matmul %35, %36, %cst_75 {dimension_numbers = #tpu.dot_dimension_numbers<[1], [0], [0], [1], [0, 0, 1, 1], [], []>} : vector<128x36xbf16>, vector<36x8xbf16>, vector<128x8xf32> -> vector<128x8xf32>
    %38 = vector.shape_cast %37 : vector<128x8xf32> to vector<8x16x8xf32>
    %c0_76 = arith.constant 0 : index
    %c0_77 = arith.constant 0 : index
    %c0_78 = arith.constant 0 : index
    %39 = vector.load %arg3[%c0_76, %c0_77, %c0_78] : memref<1x1x8xf32, #tpu.memory_space<vmem>>, vector<1x1x8xf32>
    %40 = vector.broadcast %39 : vector<1x1x8xf32> to vector<8x16x8xf32>
    %41 = arith.addf %38, %40 : vector<8x16x8xf32>
    %42 = arith.truncf %41 : vector<8x16x8xf32> to vector<8x16x8xbf16>
    %c0_79 = arith.constant 0 : index
    %c0_80 = arith.constant 0 : index
    %c0_81 = arith.constant 0 : index
    %43 = vector.load %arg4[%c0_79, %c0_80, %c0_81] : memref<8x16x8xbf16, #tpu.memory_space<vmem>>, vector<8x16x8xbf16>
    tpu.vector_store %arg4[%c0_79, %c0_80, %c0_81], %42 {strides = array<i32>} : memref<8x16x8xbf16, #tpu.memory_space<vmem>>, vector<8x16x8xbf16>,
    return
  }
  func.func @transform_0(%arg0: i32) -> (i32, i32, i32) {
    %c0_i32 = arith.constant 0 : i32
    %c0_i32_0 = arith.constant 0 : i32
    %c0_i32_1 = arith.constant 0 : i32
    return %arg0, %c0_i32, %c0_i32_0 : i32, i32, i32
  }
  func.func @transform_1(%arg0: i32) -> (i32, i32) {
    %c0_i32 = arith.constant 0 : i32
    %c0_i32_0 = arith.constant 0 : i32
    %c0_i32_1 = arith.constant 0 : i32
    return %c0_i32, %c0_i32_0 : i32, i32
  }
  func.func @transform_2(%arg0: i32) -> (i32, i32, i32) {
    %c0_i32 = arith.constant 0 : i32
    %c0_i32_0 = arith.constant 0 : i32
    %c0_i32_1 = arith.constant 0 : i32
    %c0_i32_2 = arith.constant 0 : i32
    return %c0_i32, %c0_i32_0, %c0_i32_1 : i32, i32, i32
  }
  func.func @transform_3(%arg0: i32) -> (i32, i32, i32) {
    %c0_i32 = arith.constant 0 : i32
    %c0_i32_0 = arith.constant 0 : i32
    %c0_i32_1 = arith.constant 0 : i32
    return %arg0, %c0_i32, %c0_i32_0 : i32, i32, i32
  }
}

</mosaic_0001>

<bundles_post_ra>
// kernel: tpu_custom_call.1
= control target key start
LH: loop header
LB: loop body
LE: loop exit
PB: predicated region body
PF: predicated region fallthrough
CT: control target
= control target key end

     0   :  { %s2336_s12 = smov 0   ;;  %s3434_s0 = inlined_call_operand.vmem [shape: bf16[32,16,4], index: 0, kind: input, shape index: {}]   ;;  %s3435_s1 = inlined_call_operand.vmem [shape: bf16[36,8], index: 1, kind: input, shape index: {}]   ;;  %s3436_s2 = inlined_call_operand.vmem [shape: f32[1,1,8], index: 2, kind: input, shape index: {}]   ;;  %s3437_s3 = inlined_call_operand.vmem [shape: bf16[32,16,8], index: 3, kind: output, shape index: {}]  }
   0x1 LB: > { %s2183_s13 = sadd.s32 4294967295, %s2305_s12   ;;  %p2187_p0 = scmp.ge.s32.totalorder %s2305_s12, 1  ;;  %s2305_s12 = sphi %s2336_s12, %s13_s12  }
   0x2   : > { %p139_p1 = scmp.lt.s32.totalorder %s2305_s12, 5 }
   0x4   : > { %p140_p2 = pnand %p2187_p0, %p139_p1 }
   0x5   : > { %s2188_s14 = sshll.u32 (!%p140_p2), %s2183_s13, 3  ;;  %s2307_s19 = smov (!%p140_p2), 4  }
   0x6   : > { %143 = sbr.rel (%p140_p2) target bundleno = 620 (0x26c), region = 32  ;;  %p166_p3 = scmp.lt.s32.totalorder (!%p140_p2), %s2188_s14, 31 }
   0x7   : > { %s2308_s20 = smov (!%p140_p2), 8   ;;  %s2310_s21 = smov (!%p140_p2), 12  }
   0x8   : > { %s2311_s22 = smov (!%p140_p2), 16   ;;  %s2312_s23 = smov (!%p140_p2), 24  }
   0x9   : > { %s2313_s24 = smov (!%p140_p2), 20   ;;  %s2314_s25 = smov (!%p140_p2), 28  }
   0xa   : > { %s2315_s26 = smov (!%p140_p2), 32  }
   0xb   : > { %s3469_s14 = smov (!%p166_p3, %s2188_s14), 31  ;;  %vm291_vm0 = vsmask.f32 1280  ;;  %vm333_vm1 = vsmask.f32 5392  ;;  %vm604_vm3 = vcmask 1040384  }
   0xc   : > { %s2260_s15 = sshll.u32 %s3469_s14, 3  ;;  %vm2371_vm2 = vmor %vm291_vm0, %vm333_vm1  ;;  %vm605_vm4 = vcmask 1044484   ;;  %vm180_vm6 = vcmask 25600   ;;  %vm290_vm7 = vcmask 58400   ;;  %vm272_vm8 = vcmask 27650  }
   0xd   : > { %s2352_s18 = scalar_lea.vmem %s3434_s0, %s2260_s15  ;;  %vm2411_vm5 = vmor %vm604_vm3, %vm605_vm4  ;;  %vm563_vm10 = vcmask 90176   ;;  %vm706_vm11 = vsmask.f32 256  ;;  %vm705_vm12 = vcmask 122976   ;;  %vm748_vm13 = vsmask.f32 4368  ;;  %s3382_s10 = scalar_lea.vmem %s3437_s3, %s2260_s15 }
   0xe   : > { %v321_v0 = vld [vmem:[%s2352_s18 + $0x10] sm:$0xf]  ;;  %v319_v1 = vld [vmem:[%s2352_s18 + $0x8] sm:$0xf]  ;;  %v317_v2 = vld [vmem:[%s2352_s18] sm:$0xf] }
   0xf   : > { %v372_v3 = vshrl.u32 %v321_v0, 16  ;;  %v375_v4 = vshll.u32 %v321_v0, 16  ;;  %v354_v5 = vshrl.u32 %v319_v1, 16  ;;  %v357_v6 = vshll.u32 %v319_v1, 16  ;;  %v325_v7 = vld [vmem:[%s2352_s18 + $0x20] sm:$0xf]  ;;  %vm2473_vm9 = vmand %vm290_vm7, %vm291_vm0 }
  0x10   : > { %v336_v8 = vshrl.u32 %v317_v2, 16  ;;  %v339_v9 = vshll.u32 %v317_v2, 16  ;;  %v408_v10 = vshrl.u32 %v325_v7, 16  ;;  %v411_v11 = vshll.u32 %v325_v7, 16  ;;  %v320_v12 = vld [vmem:[%s2352_s18 + $0xc] sm:$0x7]  ;;  %vm2522_vm0 = vmand %vm705_vm12, %vm706_vm11 }
  0x11   : > { %v374_v13 = vrot.slane %v372_v3, 6  ;;  %v377_v14 = vrot.slane %v375_v4, 7  ;;  %v356_v15 = vrot.slane %v354_v5, 6  ;;  %v359_v16 = vrot.slane %v357_v6, 7  ;;  %v323_v17 = vld [vmem:[%s2352_s18 + $0x18] sm:$0xf] }
  0x12   : > { %v338_v18 = vrot.slane %v336_v8, 6  ;;  %v341_v19 = vrot.slane %v339_v9, 7  ;;  %v363_v22 = vshrl.u32 %v320_v12, 16  ;;  %v366_v23 = vshll.u32 %v320_v12, 16  ;;  %v322_v27 = vld [vmem:[%s2352_s18 + $0x14] sm:$0x7] }
  0x13   : > { %v378_v20 = vor.u32 %v377_v14, %v374_v13  ;;  %v360_v21 = vor.u32 %v359_v16, %v356_v15  ;;  %v390_v25 = vshrl.u32 %v323_v17, 16  ;;  %v393_v26 = vshll.u32 %v323_v17, 16  ;;  %v324_v28 = vld [vmem:[%s2352_s18 + $0x1c] sm:$0x7]  ;;  %v318_v33 = vld [vmem:[%s2352_s18 + $0x4] sm:$0x7] }
  0x14   : > { %v2360_v24 = vor.u32 %v341_v19, %v338_v18  ;;  %v410_v29 = vrot.slane %v408_v10, 6  ;;  %v413_v30 = vrot.slane %v411_v11, 7  ;;  %v365_v31 = vrot.slane %v363_v22, 6  ;;  %v327_v45 = vld [vmem:[%s2352_s18 + $0x28] sm:$0xf] }
  0x15   : > { %487 = vrot.lane.b32.xlu2 %v378_v20, %s2307_s19  ;;  %483 = vrot.lane.b32.xlu1 %v360_v21, %s2307_s19  ;;  %v368_v32 = vrot.slane %v366_v23, 7  ;;  %v361_v34 = vrot.slane %v360_v21, 4  ;;  %v392_v35 = vrot.slane %v390_v25, 6  ;;  %v395_v36 = vrot.slane %v393_v26, 7  ;;  %v328_v53 = vld [vmem:[%s2352_s18 + $0x2c] sm:$0x7] }
  0x16   : > { %479 = vrot.lane.b32.xlu0 %v2360_v24, %s2307_s19  ;;  %v381_v39 = vshrl.u32 %v322_v27, 16  ;;  %v384_v40 = vshll.u32 %v322_v27, 16  ;;  %v399_v41 = vshrl.u32 %v324_v28, 16  ;;  %v402_v42 = vshll.u32 %v324_v28, 16  ;;  %v326_v58 = vld [vmem:[%s2352_s18 + $0x24] sm:$0x7] }
  0x17   : > { %v369_v38 = vor.u32 %v368_v32, %v365_v31  ;;  %v345_v43 = vshrl.u32 %v318_v33, 16  ;;  %v348_v44 = vshll.u32 %v318_v33, 16  ;;  %v414_v46 = vor.u32 %v413_v30, %v410_v29  ;;  %v329_v7 = vld [vmem:[%s2352_s18 + $0x30] sm:$0xf]  ;;  %v330_v13 = vld [vmem:[%s2352_s18 + $0x34] sm:$0x7] }
  0x18   : > { %v383_v47 = vrot.slane %v381_v39, 6  ;;  %v386_v48 = vrot.slane %v384_v40, 7  ;;  %v396_v50 = vor.u32 %v395_v36, %v392_v35  ;;  %v401_v51 = vrot.slane %v399_v41, 6  ;;  %v331_v22 = vld [vmem:[%s2352_s18 + $0x38] sm:$0xf] }
  0x19   : > { %v370_v49 = vsel %vm2371_vm2, %v361_v34, %v369_v38  ;;  %v404_v52 = vrot.slane %v402_v42, 7  ;;  %v347_v54 = vrot.slane %v345_v43, 6  ;;  %v350_v55 = vrot.slane %v348_v44, 7  ;;  %v332_v35 = vld [vmem:[%s2352_s18 + $0x3c] sm:$0x7] }
  0x1a   : > { %v426_v56 = vshrl.u32 %v327_v45, 16  ;;  %v429_v57 = vshll.u32 %v327_v45, 16  ;;  %v379_v59 = vrot.slane %v378_v20, 4  ;;  %v387_v60 = vor.u32 %v386_v48, %v383_v47  ;;  %v572_v41 = vld [vmem:[%s2352_s18] sm:$0xf] }
  0x1b   : > { %v435_v61 = vshrl.u32 %v328_v53, 16  ;;  %v438_v62 = vshll.u32 %v328_v53, 16  ;;  %v397_v63 = vrot.slane %v396_v50, 4  ;;  %v405_v0 = vor.u32 %v404_v52, %v401_v51  ;;  %v573_v47 = vld [vmem:[%s2352_s18 + $0x4] sm:$0x7] }
  0x1c   : > { %v428_v1 = vrot.slane %v426_v56, 6  ;;  %v431_v2 = vrot.slane %v429_v57, 7  ;;  %v343_v3 = vrot.slane %v2360_v24, 4  ;;  %v351_v4 = vor.u32 %v350_v55, %v347_v54  ;;  %v574_v55 = vld [vmem:[%s2352_s18 + $0x8] sm:$0xf] }
  0x1d   : > { %495 = vrot.lane.b32.xlu2 %v414_v46, %s2307_s19  ;;  %485 = vrot.lane.b32.xlu1 %v370_v49, %s2307_s19  ;;  %v417_v5 = vshrl.u32 %v326_v58, 16  ;;  %v420_v6 = vshll.u32 %v326_v58, 16  ;;  %v388_v8 = vsel %vm2371_vm2, %v379_v59, %v387_v60  ;;  %v437_v9 = vrot.slane %v435_v61, 6  ;;  %v575_v59 = vld [vmem:[%s2352_s18 + $0xc] sm:$0x7] }
  0x1e   : > { %491 = vrot.lane.b32.xlu0 %v396_v50, %s2307_s19  ;;  %v440_v10 = vrot.slane %v438_v62, 7  ;;  %v406_v11 = vsel %vm2371_vm2, %v397_v63, %v405_v0  ;;  %v432_v12 = vor.u32 %v431_v2, %v428_v1  ;;  %v444_v14 = vshrl.u32 %v329_v7, 16  ;;  %v576_v60 = vld [vmem:[%s2352_s18 + $0x10] sm:$0xf]  ;;  %v578_v63 = vld [vmem:[%s2352_s18 + $0x18] sm:$0xf] }
  0x1f   : > { %v447_v15 = vshll.u32 %v329_v7, 16  ;;  %v352_v16 = vsel %vm2371_vm2, %v343_v3, %v351_v4  ;;  %v419_v17 = vrot.slane %v417_v5, 6  ;;  %v422_v18 = vrot.slane %v420_v6, 7  ;;  %v579_v2 = vld [vmem:[%s2352_s18 + $0x1c] sm:$0x7] }
  0x20   : > { %v441_v19 = vor.u32 %v440_v10, %v437_v9  ;;  %v453_v20 = vshrl.u32 %v330_v13, 16  ;;  %v433_v21 = vrot.slane %v432_v12, 4  ;;  %v446_v23 = vrot.slane %v444_v14, 6  ;;  %v577_v3 = vld [vmem:[%s2352_s18 + $0x14] sm:$0x7] }
  0x21   : > { %v449_v24 = vrot.slane %v447_v15, 7  ;;  %v456_v25 = vshll.u32 %v330_v13, 16  ;;  %v415_v26 = vrot.slane %v414_v46, 4  ;;  %v423_v27 = vor.u32 %v422_v18, %v419_v17  ;;  %v582_v13 = vld [vmem:[%s2352_s18 + $0x28] sm:$0xf] }
  0x22   : > { %v462_v28 = vshrl.u32 %v331_v22, 16  ;;  %v465_v29 = vshll.u32 %v331_v22, 16  ;;  %v442_v30 = vsel %vm2371_vm2, %v433_v21, %v441_v19  ;;  %v455_v32 = vrot.slane %v453_v20, 6  ;;  %v2447_v18 = vld [vmem:[%s2352_s18 + $0x10] sm:$0xf] }
  0x23   : > { %v450_v31 = vor.u32 %v449_v24, %v446_v23  ;;  %v458_v33 = vrot.slane %v456_v25, 7  ;;  %v424_v34 = vsel %vm2371_vm2, %v415_v26, %v423_v27  ;;  %v471_v42 = vshrl.u32 %v332_v35, 16  ;;  %v585_v23 = vld [vmem:[%s2352_s18 + $0x34] sm:$0x7]  ;;  %v583_v24 = vld [vmem:[%s2352_s18 + $0x2c] sm:$0x7] }
  0x24   : > { %v464_v36 = vrot.slane %v462_v28, 6  ;;  %v467_v38 = vrot.slane %v465_v29, 7  ;;  %v474_v43 = vshll.u32 %v332_v35, 16  ;;  %v607_v46 = vrot.slane %v572_v41, 7  ;;  %v732_v25 = vld [vmem:[%s2352_s18] sm:$0xf] }
  0x25   : > { %489 = vrot.lane.b32.xlu2 %v388_v8, %s2307_s19  ;;  %493 = vrot.lane.b32.xlu1 %v406_v11, %s2307_s19  ;;  %v451_v39 = vrot.slane %v450_v31, 4  ;;  %v459_v40 = vor.u32 %v458_v33, %v455_v32  ;;  %v473_v48 = vrot.slane %v471_v42, 6  ;;  %v609_v51 = vrot.slane %v573_v47, 7  ;;  %v580_v8 = vld [vmem:[%s2352_s18 + $0x20] sm:$0xf] }
  0x26   : > { %481 = vrot.lane.b32.xlu0 %v352_v16, %s2307_s19  ;;  %v468_v44 = vor.u32 %v467_v38, %v464_v36  ;;  %v476_v49 = vrot.slane %v474_v43, 7  ;;  %v608_v50 = vrot.slane %v607_v46, 4  ;;  %v611_v57 = vrot.slane %v574_v55, 7  ;;  %v584_v16 = vld [vmem:[%s2352_s18 + $0x30] sm:$0xf] }
  0x27   : > { %v460_v45 = vsel %vm2371_vm2, %v451_v39, %v459_v40  ;;  %v613_v62 = vrot.slane %v575_v59, 7  ;;  %v615_v0 = vrot.slane %v576_v60, 7  ;;  %v619_v37 = vrot.slane %v578_v63, 7  ;;  %v2463_v26 = vld [vmem:[%s2352_s18 + $0x38] sm:$0xf] }
  0x28   : > { %v469_v52 = vrot.slane %v468_v44, 4  ;;  %v477_v54 = vor.u32 %v476_v49, %v473_v48  ;;  %v610_v56 = vsel %vm2411_vm5, %v608_v50, %v609_v51  ;;  %v612_v61 = vrot.slane %v611_v57, 4  ;;  %v2486_v36 = vld [vmem:[%s2352_s18 + $0x20] sm:$0xf]  ;;  %v2489_v38 = vld [vmem:[%s2352_s18 + $0x8] sm:$0xf] }
  0x29   : > { %v620_v4 = vrot.slane %v619_v37, 4  ;;  %v621_v5 = vrot.slane %v579_v2, 7  ;;  %v616_v6 = vrot.slane %v615_v0, 4  ;;  %v617_v7 = vrot.slane %v577_v3, 7  ;;  %v587_v40 = vld [vmem:[%s2352_s18 + $0x3c] sm:$0x7] }
  0x2a   : > { %v478_v58 = vsel %vm2371_vm2, %v469_v52, %v477_v54  ;;  %v614_v1 = vsel %vm2411_vm5, %v612_v61, %v613_v62  ;;  %v623_v10 = vrot.slane %v580_v8, 7  ;;  %v2309_v17 = vmov 0   ;;  %v735_v43 = vld [vmem:[%s2352_s18 + $0xc] sm:$0xf]  ;;  %v733_v50 = vld [vmem:[%s2352_s18 + $0x4] sm:$0xf] }
  0x2b   : > { %v622_v9 = vsel %vm2411_vm5, %v620_v4, %v621_v5  ;;  %v618_v11 = vsel %vm2411_vm5, %v616_v6, %v617_v7  ;;  %183 = vst.msk [vmem:[#allocation2 + $0x10] sm:$0x3] %vm180_vm6, %v2309_v17  ;;  %v627_v19 = vrot.slane %v582_v13, 7  ;;  %v631_v20 = vrot.slane %v584_v16, 7  ;;  %v2514_v54 = vld [vmem:[%s2352_s18 + $0x10] sm:$0xf] }
  0x2c   : > { %v624_v14 = vrot.slane %v623_v10, 4  ;;  %181 = vst.msk [vmem:[#allocation2] sm:$0x3] %vm180_vm6, %v2309_v17  ;;  %v232_v21 = vrot.slane %v2447_v18, 6  ;;  %v633_v29 = vrot.slane %v585_v23, 7  ;;  %v751_v32 = vshrl.u32 %v732_v25, 16 }
  0x2d   : > { %501 = vrot.lane.b32.xlu2 %v442_v30, %s2307_s19  ;;  %499 = vrot.lane.b32.xlu1 %v432_v12, %s2307_s19  ;;  %v581_v12 = vld [vmem:[%s2352_s18 + $0x24] sm:$0x7]  ;;  %182 = vst.msk [vmem:[#allocation2 + $0x8] sm:$0x3] %vm180_vm6, %v2309_v17  ;;  %v628_v27 = vrot.slane %v627_v19, 4  ;;  %v632_v28 = vrot.slane %v631_v20, 4 }
  0x2e   : > { %497 = vrot.lane.b32.xlu0 %v424_v34, %s2307_s19  ;;  %v625_v15 = vrot.slane %v581_v12, 7  ;;  %184 = vst.msk [vmem:[#allocation2 + $0x18] sm:$0x3] %vm180_vm6, %v2309_v17  ;;  %v635_v34 = vrot.slane %v2463_v26, 7  ;;  %v240_v39 = vrot.slane %v2486_v36, 6  ;;  %v767_v47 = vshrl.u32 %v2489_v38, 16 }
  0x2f   : > { %278 = vst.msk [vmem:[#allocation2 + $0x10] sm:$0xc] %vm272_vm8, %v232_v21  ;;  %v634_v41 = vsel %vm2411_vm5, %v632_v28, %v633_v29  ;;  %v637_v49 = vrot.slane %v587_v40, 7  ;;  %v775_v52 = vshrl.u32 %v735_v43, 16  ;;  %vm221_vm14 = vcmask 1041408  }
  0x30   : > { %v626_v22 = vsel %vm2411_vm5, %v624_v14, %v625_v15  ;;  %185 = vst.msk [vmem:[#allocation2 + $0x20] sm:$0x3] %vm180_vm6, %v2309_v17  ;;  %vm222_vm15 = vcmask 1045508   ;;  %v769_v55 = vrot.slane %v767_v47, 7  ;;  %v2527_v62 = vld [vmem:[%s2352_s18 + $0x18] sm:$0xf] }
  0x31   : > { %186 = vst.msk [vmem:[#allocation2 + $0x28] sm:$0x3] %vm180_vm6, %v2309_v17  ;;  %v783_v63 = vshrl.u32 %v2514_v54, 16  ;;  %v762_v2 = vshll.u32 %v733_v50, 16  ;;  %v2533_v4 = vld [vmem:[%s2352_s18 + $0x14] sm:$0xf]  ;;  %vm2537_vm1 = vmor %vm221_vm14, %vm222_vm15 }
  0x32   : > { %v299_v33 = vld [vmem:[#allocation2 + $0x10] sm:$0x3]  ;;  %187 = vst.msk [vmem:[#allocation2 + $0x30] sm:$0x3] %vm180_vm6, %v2309_v17  ;;  %v770_v7 = vshll.u32 %v2489_v38, 16  ;;  %vm274_vm2 = vcmask 27648  }
  0x33   : > { %v300_v35 = vsel %vm2473_vm9, 0, %v299_v33  ;;  %188 = vst.msk [vmem:[#allocation2 + $0x38] sm:$0x3] %vm180_vm6, %v2309_v17  ;;  %v2545_v8 = vld [vmem:[%s2352_s18 + $0x20] sm:$0xf]  ;;  %v799_v13 = vshrl.u32 %v2527_v62, 16 }
  0x34   : > { %301 = vst [vmem:[#allocation2 + $0x10] sm:$0x3] %v300_v35  ;;  %vm527_vm3 = vcmask 60449   ;;  %vm528_vm4 = vsmask.f32 7942  ;;  %v802_v53 = vshll.u32 %v2527_v62, 16  ;;  %v772_v38 = vor.u32 %v770_v7, %v769_v55 }
  0x35   : > { %507 = vrot.lane.b32.xlu2 %v468_v44, %s2307_s19  ;;  %505 = vrot.lane.b32.xlu1 %v460_v45, %s2307_s19  ;;  %566 = vst.msk [vmem:[#allocation2 + $0x10] sm:$0x1] %vm563_vm10, %v2309_v17  ;;  %v2503_v44 = vrot.slane %v751_v32, 7  ;;  %v754_v45 = vshll.u32 %v732_v25, 16  ;;  %v2553_v14 = vrot.slane %v783_v63, 7  ;;  %v791_v15 = vshrl.u32 %v2533_v4, 16  ;;  %vm2620_vm6 = vmand %vm527_vm3, %vm528_vm4 }
  0x36   : > { %503 = vrot.lane.b32.xlu0 %v450_v31, %s2307_s19  ;;  %v629_v31 = vrot.slane %v583_v24, 7  ;;  %282 = vst.msk [vmem:[#allocation2 + $0x20] sm:$0xc] %vm272_vm8, %v240_v39  ;;  %v786_v16 = vshll.u32 %v2514_v54, 16  ;;  %v296_v18 = vld [vmem:[#allocation2 + $0x8] sm:$0x3] }
  0x37   : > { %v305_v48 = vld [vmem:[#allocation2 + $0x20] sm:$0x3]  ;;  %v756_v59 = vor.u32 %v754_v45, %v2503_v44  ;;  %v191_v23 = vld [vmem:[%s2352_s18 + $0x8] sm:$0xf]  ;;  %v200_v32 = vld [vmem:[%s2352_s18 + $0x2c] sm:$0x3] }
  0x38   : > { %v630_v42 = vsel %vm2411_vm5, %v628_v27, %v629_v31  ;;  %v306_v51 = vsel %vm2473_vm9, 0, %v305_v48  ;;  %v2575_v27 = vld [vmem:[%s2352_s18 + $0x24] sm:$0xf]  ;;  %v228_v28 = vrot.slane %v191_v23, 6  ;;  %v199_v31 = vld [vmem:[%s2352_s18 + $0x28] sm:$0xf] }
  0x39   : > { %307 = vst [vmem:[#allocation2 + $0x20] sm:$0x3] %v306_v51  ;;  %v244_v26 = vrot.slane %v199_v31, 6  ;;  %v246_v33 = vrot.slane %v200_v32, 6  ;;  %v823_v40 = vshrl.u32 %v2575_v27, 16  ;;  %v2595_v48 = vrot.slane %v799_v13, 7 }
  0x3a   : > { %568 = vst.msk [vmem:[#allocation2 + $0x20] sm:$0x1] %vm563_vm10, %v2309_v17  ;;  %v302_v13 = vld [vmem:[#allocation2 + $0x18] sm:$0x3]  ;;  %v2649_v23 = vld [vmem:[%s2352_s18 + $0x30] sm:$0xf] }
  0x3b   : > { %276 = vst.msk [vmem:[#allocation2 + $0x8] sm:$0xc] %vm272_vm8, %v228_v28  ;;  %v245_v45 = vrot.slane %v244_v26, 4  ;;  %vm533_vm7 = vcmask 60448   ;;  %v204_v30 = vld [vmem:[%s2352_s18 + $0x3c] sm:$0x3] }
  0x3c   : > { %v714_v61 = vld [vmem:[#allocation2 + $0x10] sm:$0x1]  ;;  %284 = vst.msk [vmem:[#allocation2 + $0x28] sm:$0xc] %vm272_vm8, %v244_v26  ;;  %vm1102_vm12 = vsmask.f32 3328 }
  0x3d   : > { %641 = vrot.lane.b32.xlu2 %v610_v56, %s2308_s20  ;;  %639 = vrot.lane.b32.xlu1 %v607_v46, %s2308_s20  ;;  %v636_v46 = vrot.slane %v635_v34, 4  ;;  %v759_v56 = vshrl.u32 %v733_v50, 16  ;;  %v715_v3 = vsel %vm2522_vm0, 0, %v714_v61  ;;  %v2599_v50 = vld [vmem:[%s2352_s18 + $0x1c] sm:$0xf]  ;;  %vm1382_vm3 = vcmask 1046532  }
  0x3e   : > { %509 = vrot.lane.b32.xlu0 %v478_v58, %s2307_s19  ;;  %v233_v58 = vrot.slane %v232_v21, 4  ;;  %716 = vst [vmem:[#allocation2 + $0x10] sm:$0x1] %v715_v3  ;;  %v815_v21 = vshrl.u32 %v2545_v8, 16  ;;  %v807_v63 = vshrl.u32 %v2599_v50, 16 }
  0x3f   : > { %v638_v6 = vsel %vm2411_vm5, %v636_v46, %v637_v49  ;;  %v761_v12 = vrot.slane %v759_v56, 7  ;;  %vm2568_vm5 = vmor %vm706_vm11, %vm748_vm13  ;;  %v789_v49 = vrot.slane %v2553_v14, 4  ;;  %v192_v56 = vld [vmem:[%s2352_s18 + $0xc] sm:$0x3]  ;;  %vm927_vm11 = vsmask.f32 7938 }
  0x40   : > { %v2601_v51 = vrot.slane %v815_v21, 7  ;;  %v230_v7 = vrot.slane %v192_v56, 6  ;;  %v810_v21 = vshll.u32 %v2599_v50, 16  ;;  %vm1103_vm13 = vsmask.f32 7440 }
  0x41   : > { %v764_v29 = vor.u32 %v762_v2, %v761_v12  ;;  %v804_v12 = vor.u32 %v802_v53, %v2595_v48 }
  0x42   : > { %v821_v32 = vrot.slane %v2601_v51, 4 }
  0x45   : > { %647 = vrot.lane.b32.xlu2 %v615_v0, %s2308_s20  ;;  %645 = vrot.lane.b32.xlu1 %v614_v1, %s2308_s20  ;;  %v777_v1 = vrot.slane %v775_v52, 7  ;;  %v826_v52 = vshll.u32 %v2575_v27, 16 }
  0x46   : > { %643 = vrot.lane.b32.xlu0 %v611_v57, %s2308_s20  ;;  %v194_v57 = vld [vmem:[%s2352_s18 + $0x14] sm:$0x3] }
  0x47   : > { %v234_v0 = vrot.slane %v194_v57, 6  ;;  %v539_v57 = vld [vmem:[#allocation2 + $0x10] sm:$0xe] }
  0x4d   : > { %653 = vrot.lane.b32.xlu2 %v622_v9, %s2308_s20  ;;  %651 = vrot.lane.b32.xlu1 %v619_v37, %s2308_s20  ;;  %v778_v37 = vshll.u32 %v735_v43, 16  ;;  %v235_v9 = vsel %vm2537_vm1, %v233_v58, %v234_v0  ;;  %v793_v43 = vrot.slane %v791_v15, 7  ;;  %v825_v58 = vrot.slane %v823_v40, 7  ;;  %v314_v0 = vld [vmem:[#allocation2 + $0x38] sm:$0x3] }
  0x4e   : > { %649 = vrot.lane.b32.xlu0 %v618_v11, %s2308_s20  ;;  %v757_v11 = vrot.slane %v2503_v44, 4  ;;  %279 = vst.msk [vmem:[#allocation2 + $0x14] sm:$0xf] %vm274_vm2, %v235_v9  ;;  %v794_v44 = vshll.u32 %v2533_v4, 16  ;;  %v315_v4 = vsel %vm2473_vm9, 0, %v314_v0  ;;  %v850_v0 = vshll.u32 %v2649_v23, 16 }
  0x4f   : > { %v2632_v9 = vld [vmem:[%s2352_s18 + $0x28] sm:$0xf]  ;;  %316 = vst [vmem:[#allocation2 + $0x38] sm:$0x3] %v315_v4  ;;  %v195_v15 = vld [vmem:[%s2352_s18 + $0x18] sm:$0xf]  ;;  %v828_v26 = vor.u32 %v826_v52, %v825_v58 }
  0x50   : > { %v765_v47 = vsel %vm2568_vm5, %v757_v11, %v764_v29  ;;  %v796_v61 = vor.u32 %v794_v44, %v793_v43  ;;  %v831_v62 = vshrl.u32 %v2632_v9, 16  ;;  %571 = vst.msk [vmem:[#allocation2 + $0x38] sm:$0x1] %vm563_vm10, %v2309_v17  ;;  %v236_v27 = vrot.slane %v195_v15, 6  ;;  %v190_v40 = vld [vmem:[%s2352_s18 + $0x4] sm:$0x3] }
  0x52   : > { %v237_v31 = vrot.slane %v236_v27, 4  ;;  %280 = vst.msk [vmem:[#allocation2 + $0x18] sm:$0xc] %vm272_vm8, %v236_v27 }
  0x55   : > { %659 = vrot.lane.b32.xlu2 %v627_v19, %s2308_s20  ;;  %657 = vrot.lane.b32.xlu1 %v626_v22, %s2308_s20  ;;  %v780_v19 = vor.u32 %v778_v37, %v777_v1  ;;  %v297_v22 = vsel %vm2473_vm9, 0, %v296_v18  ;;  %v229_v1 = vrot.slane %v228_v28, 4  ;;  %v797_v18 = vsel %vm2568_vm5, %v789_v49, %v796_v61  ;;  %v547_v28 = vld [vmem:[#allocation2 + $0x20] sm:$0xe]  ;;  %v198_v61 = vld [vmem:[%s2352_s18 + $0x24] sm:$0x3] }
  0x56   : > { %655 = vrot.lane.b32.xlu0 %v623_v10, %s2308_s20  ;;  %v773_v10 = vrot.slane %v769_v55, 4  ;;  %298 = vst [vmem:[#allocation2 + $0x8] sm:$0x3] %v297_v22  ;;  %v247_v55 = vsel %vm2537_vm1, %v245_v45, %v246_v33  ;;  %v743_v22 = vld [vmem:[%s2352_s18 + $0x2c] sm:$0xf]  ;;  %v805_v33 = vrot.slane %v2595_v48, 4 }
  0x57   : > { %565 = vst.msk [vmem:[#allocation2 + $0x8] sm:$0x1] %vm563_vm10, %v2309_v17  ;;  %v839_v29 = vshrl.u32 %v743_v22, 16  ;;  %v847_v45 = vshrl.u32 %v2649_v23, 16  ;;  %v833_v48 = vrot.slane %v831_v62, 7  ;;  %v842_v50 = vshll.u32 %v743_v22, 16 }
  0x58   : > { %v781_v35 = vsel %vm2568_vm5, %v773_v10, %v780_v19  ;;  %285 = vst.msk [vmem:[#allocation2 + $0x2c] sm:$0xf] %vm274_vm2, %v247_v55  ;;  %v788_v19 = vor.u32 %v786_v16, %v2553_v14  ;;  %v303_v14 = vsel %vm2473_vm9, 0, %v302_v13  ;;  %v196_v16 = vld [vmem:[%s2352_s18 + $0x1c] sm:$0x3] }
  0x59   : > { %304 = vst [vmem:[#allocation2 + $0x18] sm:$0x3] %v303_v14  ;;  %v841_v49 = vrot.slane %v839_v29, 7  ;;  %v729_v52 = vld [vmem:[#allocation2 + $0x38] sm:$0x1] }
  0x5a   : > { %567 = vst.msk [vmem:[#allocation2 + $0x18] sm:$0x1] %vm563_vm10, %v2309_v17  ;;  %v308_v55 = vld [vmem:[#allocation2 + $0x28] sm:$0x3]  ;;  %v730_v58 = vsel %vm2522_vm0, 0, %v729_v52 }
  0x5b   : > { %731 = vst [vmem:[#allocation2 + $0x38] sm:$0x1] %v730_v58  ;;  %v844_v4 = vor.u32 %v842_v50, %v841_v49  ;;  %v746_v23 = vld [vmem:[%s2352_s18 + $0x38] sm:$0xf]  ;;  %v202_v62 = vld [vmem:[%s2352_s18 + $0x34] sm:$0x3] }
  0x5d   : > { %665 = vrot.lane.b32.xlu2 %v634_v41, %s2308_s20  ;;  %663 = vrot.lane.b32.xlu1 %v631_v20, %s2308_s20  ;;  %v720_v20 = vld [vmem:[#allocation2 + $0x20] sm:$0x1]  ;;  %v535_v22 = vld [vmem:[#allocation2 + $0x8] sm:$0xe] }
  0x5e   : > { %661 = vrot.lane.b32.xlu0 %v630_v42, %s2308_s20  ;;  %v721_v25 = vsel %vm2522_vm0, 0, %v720_v20  ;;  %v2588_v42 = vld [vmem:[%s2352_s18] sm:$0xf]  ;;  %v711_v3 = vld [vmem:[#allocation2 + $0x8] sm:$0x1]  ;;  %v809_v20 = vrot.slane %v807_v63, 7 }
  0x5f   : > { %722 = vst [vmem:[#allocation2 + $0x20] sm:$0x1] %v721_v25  ;;  %v224_v46 = vrot.slane %v2588_v42, 6  ;;  %v712_v10 = vsel %vm2522_vm0, 0, %v711_v3  ;;  %v231_v25 = vsel %vm2537_vm1, %v229_v1, %v230_v7  ;;  %v849_v63 = vrot.slane %v847_v45, 7 }
  0x60   : > { %713 = vst [vmem:[#allocation2 + $0x8] sm:$0x1] %v712_v10  ;;  %v241_v1 = vrot.slane %v240_v39, 4  ;;  %v837_v3 = vrot.slane %v833_v48, 4  ;;  %v834_v7 = vshll.u32 %v2632_v9, 16 }
  0x61   : > { %273 = vst.msk [vmem:[#allocation2] sm:$0xc] %vm272_vm8, %v224_v46  ;;  %v852_v9 = vor.u32 %v850_v0, %v849_v63  ;;  %v543_v50 = vld [vmem:[#allocation2 + $0x18] sm:$0xe] }
  0x62   : > { %277 = vst.msk [vmem:[#allocation2 + $0xc] sm:$0xf] %vm274_vm2, %v231_v25  ;;  %v845_v13 = vsel %vm2568_vm5, %v837_v3, %v844_v4  ;;  %v836_v15 = vor.u32 %v834_v7, %v833_v48  ;;  %v747_v48 = vld [vmem:[%s2352_s18 + $0x3c] sm:$0xf] }
  0x65   : > { %878 = vrot.lane.b32.xlu2 %v756_v59, %s2310_s21  ;;  %669 = vrot.lane.b32.xlu1 %v638_v6, %s2308_s20  ;;  %v818_v59 = vshll.u32 %v2545_v8, 16  ;;  %v2627_v6 = vld [vmem:[%s2352_s18 + $0x38] sm:$0xf] }
  0x66   : > { %667 = vrot.lane.b32.xlu0 %v635_v34, %s2308_s20  ;;  %v293_v34 = vld [vmem:[#allocation2] sm:$0x3]  ;;  %v252_v11 = vrot.slane %v2627_v6, 6 }
  0x67   : > { %v294_v41 = vsel %vm2473_vm9, 0, %v293_v34  ;;  %v820_v44 = vor.u32 %v818_v59, %v2601_v51  ;;  %v309_v59 = vsel %vm2473_vm9, 0, %v308_v55  ;;  %v254_v55 = vrot.slane %v204_v30, 6 }
  0x68   : > { %295 = vst [vmem:[#allocation2] sm:$0x3] %v294_v41  ;;  %v225_v41 = vrot.slane %v224_v46, 4  ;;  %v829_v46 = vsel %vm2568_vm5, %v821_v32, %v828_v26 }
  0x69   : > { %564 = vst.msk [vmem:[#allocation2] sm:$0x1] %vm563_vm10, %v2309_v17 }
  0x6a   : > { %288 = vst.msk [vmem:[#allocation2 + $0x38] sm:$0xc] %vm272_vm8, %v252_v11 }
  0x6b   : > { %310 = vst [vmem:[#allocation2 + $0x28] sm:$0x3] %v309_v59 }
  0x6c   : > { %569 = vst.msk [vmem:[#allocation2 + $0x28] sm:$0x1] %vm563_vm10, %v2309_v17 }
  0x6d   : > { %884 = vrot.lane.b32.xlu2 %v781_v35, %s2310_s21  ;;  %882 = vrot.lane.b32.xlu1 %v772_v38, %s2310_s21  ;;  %v812_v35 = vor.u32 %v810_v21, %v809_v20  ;;  %v238_v38 = vrot.slane %v196_v16, 6  ;;  %v201_v20 = vld [vmem:[%s2352_s18 + $0x30] sm:$0xf] }
  0x6e   : > { %880 = vrot.lane.b32.xlu0 %v765_v47, %s2310_s21  ;;  %v226_v47 = vrot.slane %v190_v40, 6  ;;  %v248_v21 = vrot.slane %v201_v20, 6  ;;  %v977_v20 = vld [vmem:[%s2352_s18 + $0x3c] sm:$0xf] }
  0x6f   : > { %v488_v2 = vpop.permute.xlu2 %487  ;;  %v239_v42 = vsel %vm2537_vm1, %v237_v31, %v238_v38  ;;  %v813_v56 = vsel %vm2568_vm5, %v805_v33, %v812_v35  ;;  %v311_v31 = vld [vmem:[#allocation2 + $0x30] sm:$0x3]  ;;  %v863_v33 = vshrl.u32 %v746_v23, 16  ;;  %v975_v38 = vld [vmem:[%s2352_s18 + $0x34] sm:$0xf] }
  0x70   : > { %v540_v8 = vsel %vm2620_vm6, %v488_v2, %v539_v57  ;;  %v708_v53 = vld [vmem:[#allocation2] sm:$0x1]  ;;  %v227_v51 = vsel %vm2537_vm1, %v225_v41, %v226_v47  ;;  %v745_v57 = vld [vmem:[%s2352_s18 + $0x34] sm:$0xf]  ;;  %281 = vst.msk [vmem:[#allocation2 + $0x1c] sm:$0xf] %vm274_vm2, %v239_v42 }
  0x71   : > { %541 = vst [vmem:[#allocation2 + $0x10] sm:$0xe] %v540_v8  ;;  %v709_v54 = vsel %vm2522_vm0, 0, %v708_v53  ;;  %v242_v2 = vrot.slane %v198_v61, 6  ;;  %v855_v10 = vshrl.u32 %v745_v57, 16  ;;  %v249_v27 = vrot.slane %v248_v21, 4 }
  0x72   : > { %710 = vst [vmem:[#allocation2] sm:$0x1] %v709_v54  ;;  %v530_v53 = vld [vmem:[#allocation2] sm:$0xe]  ;;  %v250_v54 = vrot.slane %v202_v62, 6  ;;  %v865_v45 = vrot.slane %v863_v33, 7 }
  0x73   : > { %275 = vst.msk [vmem:[#allocation2 + $0x4] sm:$0xf] %vm274_vm2, %v227_v51  ;;  %v243_v36 = vsel %vm2537_vm1, %v241_v1, %v242_v2  ;;  %v723_v25 = vld [vmem:[#allocation2 + $0x28] sm:$0x1]  ;;  %v971_v41 = vld [vmem:[%s2352_s18 + $0x24] sm:$0xf] }
  0x74   : > { %283 = vst.msk [vmem:[#allocation2 + $0x24] sm:$0xf] %vm274_vm2, %v243_v36  ;;  %v251_v40 = vsel %vm2537_vm1, %v249_v27, %v250_v54  ;;  %v866_v47 = vshll.u32 %v746_v23, 16  ;;  %v559_v49 = vld [vmem:[#allocation2 + $0x38] sm:$0xe]  ;;  %v253_v42 = vrot.slane %v252_v11, 4 }
  0x75   : > { %890 = vrot.lane.b32.xlu2 %v804_v12, %s2310_s21  ;;  %888 = vrot.lane.b32.xlu1 %v797_v18, %s2310_s21  ;;  %v717_v12 = vld [vmem:[#allocation2 + $0x18] sm:$0x1]  ;;  %v857_v18 = vrot.slane %v855_v10, 7  ;;  %286 = vst.msk [vmem:[#allocation2 + $0x30] sm:$0xc] %vm272_vm8, %v248_v21  ;;  %v871_v51 = vshrl.u32 %v747_v48, 16 }
  0x76   : > { %886 = vrot.lane.b32.xlu0 %v788_v19, %s2310_s21  ;;  %v718_v39 = vsel %vm2522_vm0, 0, %v717_v12  ;;  %v858_v19 = vshll.u32 %v745_v57, 16  ;;  %287 = vst.msk [vmem:[#allocation2 + $0x34] sm:$0xf] %vm274_vm2, %v251_v40  ;;  %v868_v59 = vor.u32 %v866_v47, %v865_v45  ;;  %v1099_v61 = vld [vmem:[%s2352_s18 + $0x34] sm:$0xf]  ;;  %v255_v6 = vsel %vm2537_vm1, %v253_v42, %v254_v55 }
  0x77   : > { %v496_v34 = vpop.permute.xlu2 %495  ;;  %719 = vst [vmem:[#allocation2 + $0x18] sm:$0x1] %v718_v39  ;;  %v967_v11 = vld [vmem:[%s2352_s18 + $0x14] sm:$0xf]  ;;  %v873_v0 = vrot.slane %v871_v51, 7  ;;  %v874_v1 = vshll.u32 %v747_v48, 16 }
  0x78   : > { %v548_v43 = vsel %vm2620_vm6, %v496_v34, %v547_v28  ;;  %v853_v28 = vrot.slane %v849_v63, 4  ;;  %v860_v29 = vor.u32 %v858_v19, %v857_v18  ;;  %v724_v34 = vsel %vm2522_vm0, 0, %v723_v25  ;;  %v963_v63 = vld [vmem:[%s2352_s18 + $0x4] sm:$0xf]  ;;  %289 = vst.msk [vmem:[#allocation2 + $0x3c] sm:$0xf] %vm274_vm2, %v255_v6 }
  0x79   : > { %549 = vst [vmem:[#allocation2 + $0x20] sm:$0xe] %v548_v43  ;;  %v312_v43 = vsel %vm2473_vm9, 0, %v311_v31  ;;  %v1095_v2 = vld [vmem:[%s2352_s18 + $0x24] sm:$0xf]  ;;  %v1229_v3 = vshll.u32 %v1099_v61, 16 }
  0x7a   : > { %725 = vst [vmem:[#allocation2 + $0x28] sm:$0x1] %v724_v34  ;;  %v1233_v4 = vshrl.u32 %v1099_v61, 16  ;;  %v1195_v10 = vshrl.u32 %v1095_v2, 16  ;;  %vm689_vm8 = vcmask 93248   ;;  %vm687_vm9 = vcmask 93249  }
  0x7b   : > { %313 = vst [vmem:[#allocation2 + $0x30] sm:$0x3] %v312_v43  ;;  %v2763_v18 = vrot.slane %v1229_v3, 5  ;;  %v2768_v21 = vld [vmem:[%s2352_s18 + $0x24] sm:$0xf]  ;;  %vm1381_vm2 = vcmask 1042432  }
  0x7c   : > { %570 = vst.msk [vmem:[#allocation2 + $0x30] sm:$0x1] %vm563_vm10, %v2309_v17  ;;  %v1235_v19 = vrot.slane %v1233_v4, 4  ;;  %v1197_v23 = vrot.slane %v1195_v10, 4  ;;  %v551_v27 = vld [vmem:[#allocation2 + $0x28] sm:$0xe]  ;;  %vm2899_vm4 = vmor %vm1381_vm2, %vm1382_vm3 }
  0x7d   : > { %896 = vrot.lane.b32.xlu2 %v829_v46, %s2310_s21  ;;  %894 = vrot.lane.b32.xlu1 %v820_v44, %s2310_s21  ;;  %v861_v44 = vsel %vm2568_vm5, %v853_v28, %v860_v29  ;;  %v1087_v34 = vld [vmem:[%s2352_s18 + $0x4] sm:$0xf]  ;;  %v1094_v3 = vld [vmem:[%s2352_s18 + $0x20] sm:$0xf]  ;;  %vm926_vm10 = vcmask 126048   ;;  %vm1340_vm2 = vcmask 224451  }
  0x7e   : > { %892 = vrot.lane.b32.xlu0 %v813_v56, %s2310_s21  ;;  %v1236_v25 = vor.u32 %v1235_v19, %v2763_v18  ;;  %v1119_v43 = vshrl.u32 %v1087_v34, 16  ;;  %v2808_v51 = vld [vmem:[%s2352_s18 + $0x4] sm:$0xf]  ;;  %v2831_v19 = vld [vmem:[%s2352_s18 + $0x14] sm:$0xf]  ;;  %vm2848_vm15 = vmand %vm926_vm10, %vm927_vm11  ;;  %vm1490_vm3 = vcmask 257250  }
  0x7f   : > { %v490_v8 = vpop.permute.xlu2 %489  ;;  %vm1060_vm11 = vsmask.f32 7950 }
  0x80   : > { %542 = vst.msk [vmem:[#allocation2 + $0x14] sm:$0xf] %vm533_vm7, %v490_v8  ;;  %v1191_v8 = vshll.u32 %v1095_v2, 16  ;;  %v1237_v31 = vrot.slane %v1236_v25, 4 }
  0x82   : > { %v2771_v60 = vrot.slane %v1191_v8, 5 }
  0x83   : > { %v726_v7 = vld [vmem:[#allocation2 + $0x30] sm:$0x1] }
  0x84   : > { %v727_v12 = vsel %vm2522_vm0, 0, %v726_v7  ;;  %v1198_v54 = vor.u32 %v1197_v23, %v2771_v60  ;;  %v1396_v23 = vrot.slane %v2831_v19, 5  ;;  %vm2854_vm0 = vmor %vm1102_vm12, %vm1103_vm13 }
  0x85   : > { %902 = vrot.lane.b32.xlu2 %v852_v9, %s2310_s21  ;;  %900 = vrot.lane.b32.xlu1 %v845_v13, %s2310_s21  ;;  %v869_v9 = vrot.slane %v865_v45, 4  ;;  %v876_v13 = vor.u32 %v874_v1, %v873_v0  ;;  %728 = vst [vmem:[#allocation2 + $0x30] sm:$0x1] %v727_v12 }
  0x86   : > { %898 = vrot.lane.b32.xlu0 %v836_v15, %s2310_s21  ;;  %v1199_v33 = vrot.slane %v1198_v54, 4 }
  0x87   : > { %v502_v14 = vpop.permute.xlu2 %501  ;;  %v484_v16 = vpop.permute.xlu1 %483  ;;  %v877_v62 = vsel %vm2568_vm5, %v869_v9, %v876_v13  ;;  %v1182_v13 = vshrl.u32 %v1094_v3, 16  ;;  %vm1533_vm5 = vsmask.f32 2304 }
  0x88   : > { %554 = vst.msk [vmem:[#allocation2 + $0x2c] sm:$0xf] %vm533_vm7, %v502_v14  ;;  %v536_v32 = vsel %vm2620_vm6, %v484_v16, %v535_v22  ;;  %v480_v26 = vpop.permute.xlu0 %479  ;;  %v973_v22 = vld [vmem:[%s2352_s18 + $0x2c] sm:$0xf] }
  0x89   : > { %537 = vst [vmem:[#allocation2 + $0x8] sm:$0xe] %v536_v32  ;;  %v531_v35 = vsel %vm2620_vm6, %v480_v26, %v530_v53  ;;  %v1406_v53 = vrot.slane %v2768_v21, 5  ;;  %v2788_v32 = vld [vmem:[%s2352_s18 + $0x34] sm:$0xf] }
  0x8a   : > { %532 = vst [vmem:[#allocation2] sm:$0xe] %v531_v35  ;;  %v1091_v26 = vld [vmem:[%s2352_s18 + $0x14] sm:$0xf]  ;;  %v1416_v35 = vrot.slane %v2788_v32, 5 }
  0x8b   : > { %v1408_v29 = vrot.slane %v1406_v53, 4  ;;  %v1157_v40 = vshrl.u32 %v1091_v26, 16 }
  0x8c   : > { %v1418_v30 = vrot.slane %v1416_v35, 4 }
  0x8d   : > { %1020 = vrot.lane.b32.xlu2 %v975_v38, %s2311_s22  ;;  %1012 = vrot.lane.b32.xlu1 %v971_v41, %s2311_s22  ;;  %v1153_v38 = vshll.u32 %v1091_v26, 16  ;;  %v1115_v41 = vshll.u32 %v1087_v34, 16 }
  0x8e   : > { %904 = vrot.lane.b32.xlu0 %v861_v44, %s2310_s21  ;;  %v555_v44 = vld [vmem:[#allocation2 + $0x30] sm:$0xe] }
  0x8f   : > { %v508_v46 = vpop.permute.xlu2 %507  ;;  %v486_v52 = vpop.permute.xlu1 %485  ;;  %v2802_v42 = vrot.slane %v1153_v38, 5  ;;  %v2810_v55 = vrot.slane %v1115_v41, 5 }
  0x90   : > { %v560_v56 = vsel %vm2620_vm6, %v508_v46, %v559_v49  ;;  %538 = vst.msk [vmem:[#allocation2 + $0xc] sm:$0xf] %vm533_vm7, %v486_v52  ;;  %v492_v57 = vpop.permute.xlu0 %491  ;;  %v969_v49 = vld [vmem:[%s2352_s18 + $0x1c] sm:$0xf]  ;;  %v1159_v46 = vrot.slane %v1157_v40, 4 }
  0x91   : > { %561 = vst [vmem:[#allocation2 + $0x38] sm:$0xe] %v560_v56  ;;  %v544_v58 = vsel %vm2620_vm6, %v492_v57, %v543_v50  ;;  %v965_v50 = vld [vmem:[%s2352_s18 + $0xc] sm:$0xf]  ;;  %v1121_v56 = vrot.slane %v1119_v43, 4 }
  0x92   : > { %545 = vst [vmem:[#allocation2 + $0x18] sm:$0xe] %v544_v58  ;;  %v1101_v57 = vld [vmem:[%s2352_s18 + $0x3c] sm:$0xf]  ;;  %v1097_v58 = vld [vmem:[%s2352_s18 + $0x2c] sm:$0xf]  ;;  %v1160_v61 = vor.u32 %v1159_v46, %v2802_v42 }
  0x93   : > { %v1248_v6 = vshll.u32 %v1101_v57, 16  ;;  %v1252_v37 = vshrl.u32 %v1101_v57, 16  ;;  %v1122_v0 = vor.u32 %v1121_v56, %v2810_v55  ;;  %v1526_v46 = vld [vmem:[%s2352_s18 + $0x24] sm:$0xf]  ;;  %v974_v56 = vld [vmem:[%s2352_s18 + $0x30] sm:$0xf] }
  0x94   : > { %v1161_v8 = vrot.slane %v1160_v61, 4  ;;  %v970_v57 = vld [vmem:[%s2352_s18 + $0x20] sm:$0xf] }
  0x95   : > { %906 = vrot.lane.b32.xlu2 %v868_v59, %s2310_s21  ;;  %1004 = vrot.lane.b32.xlu1 %v967_v11, %s2311_s22  ;;  %v1386_v59 = vrot.slane %v2808_v51, 5  ;;  %v1210_v11 = vshll.u32 %v1097_v58, 16  ;;  %v2825_v10 = vrot.slane %v1248_v6, 5  ;;  %v1254_v12 = vrot.slane %v1252_v37, 4 }
  0x96   : > { %996 = vrot.lane.b32.xlu0 %v963_v63, %s2311_s22  ;;  %v1214_v63 = vshrl.u32 %v1097_v58, 16  ;;  %v1123_v9 = vrot.slane %v1122_v0, 4  ;;  %v1622_v37 = vshrl.u32 %v1526_v46, 16 }
  0x97   : > { %v642_v36 = vpop.permute.xlu2 %641  ;;  %v494_v39 = vpop.permute.xlu1 %493  ;;  %v1388_v7 = vrot.slane %v1386_v59, 4 }
  0x98   : > { %546 = vst.msk [vmem:[#allocation2 + $0x1c] sm:$0xf] %vm533_vm7, %v494_v39  ;;  %v482_v15 = vpop.permute.xlu0 %481  ;;  %v1216_v39 = vrot.slane %v1214_v63, 4 }
  0x99   : > { %534 = vst.msk [vmem:[#allocation2 + $0x4] sm:$0xf] %vm533_vm7, %v482_v15  ;;  %v1185_v15 = vshll.u32 %v1094_v3, 16 }
  0x9a   : > { %690 = vst.msk [vmem:[#allocation2 + $0x4] sm:$0xf] %vm689_vm8, %v642_v36  ;;  %v2827_v36 = vrot.slane %v1210_v11, 5  ;;  %v1625_v11 = vshll.u32 %v1526_v46, 16 }
  0x9b   : > { %v1187_v25 = vrot.slane %v1185_v15, 5 }
  0x9d   : > { %1024 = vrot.lane.b32.xlu2 %v977_v20, %s2311_s22  ;;  %1016 = vrot.lane.b32.xlu1 %v973_v22, %s2311_s22  ;;  %v1255_v20 = vor.u32 %v1254_v12, %v2825_v10  ;;  %v1217_v22 = vor.u32 %v1216_v39, %v2827_v36  ;;  %v1627_v12 = vrot.slane %v1625_v11, 6  ;;  %v1361_v39 = vld [vmem:[%s2352_s18 + $0x30] sm:$0xe] }
  0x9e   : > { %908 = vrot.lane.b32.xlu0 %v877_v62, %s2310_s21  ;;  %v1184_v62 = vrot.slane %v1182_v13, 4 }
  0x9f   : > { %v648_v14 = vpop.permute.xlu2 %647  ;;  %v500_v24 = vpop.permute.xlu1 %499 }
  0xa0   : > { %693 = vst.msk [vmem:[#allocation2 + $0x10] sm:$0xe] %vm687_vm9, %v648_v14  ;;  %v552_v16 = vsel %vm2620_vm6, %v500_v24, %v551_v27  ;;  %v498_v28 = vpop.permute.xlu0 %497  ;;  %v1098_v24 = vld [vmem:[%s2352_s18 + $0x30] sm:$0xf] }
  0xa1   : > { %553 = vst [vmem:[#allocation2 + $0x28] sm:$0xe] %v552_v16  ;;  %v1256_v16 = vrot.slane %v1255_v20, 4  ;;  %v1220_v26 = vshrl.u32 %v1098_v24, 16 }
  0xa2   : > { %550 = vst.msk [vmem:[#allocation2 + $0x24] sm:$0xf] %vm533_vm7, %v498_v28  ;;  %v1218_v28 = vrot.slane %v1217_v22, 4 }
  0xa5   : > { %1442 = vrot.lane.b32.xlu2 %v1408_v29, %s2312_s23  ;;  %1283 = vrot.lane.b32.xlu1 %v1237_v31, %s2313_s24  ;;  %v1398_v29 = vrot.slane %v1396_v23, 4  ;;  %v1188_v31 = vor.u32 %v1187_v25, %v1184_v62  ;;  %v1357_v25 = vld [vmem:[%s2352_s18 + $0x20] sm:$0xe] }
  0xa6   : > { %1275 = vrot.lane.b32.xlu0 %v1199_v33, %s2313_s24  ;;  %v1223_v33 = vshll.u32 %v1098_v24, 16 }
  0xa7   : > { %v654_v45 = vpop.permute.xlu2 %653  ;;  %v506_v47 = vpop.permute.xlu1 %505  ;;  %v1189_v38 = vrot.slane %v1188_v31, 4 }
  0xa8   : > { %696 = vst.msk [vmem:[#allocation2 + $0x1c] sm:$0xf] %vm689_vm8, %v654_v45  ;;  %v504_v48 = vpop.permute.xlu0 %503  ;;  %v1222_v45 = vrot.slane %v1220_v26, 4 }
  0xa9   : > { %558 = vst.msk [vmem:[#allocation2 + $0x34] sm:$0xf] %vm533_vm7, %v506_v47  ;;  %v556_v52 = vsel %vm2620_vm6, %v504_v48, %v555_v44  ;;  %v1225_v47 = vrot.slane %v1223_v33, 5  ;;  %vm1534_vm6 = vsmask.f32 6416 }
  0xaa   : > { %557 = vst [vmem:[#allocation2 + $0x30] sm:$0xe] %v556_v52  ;;  %v1194_v52 = vsel %vm2854_vm0, %v1189_v38, %v2771_v60  ;;  %v1519_v44 = vld [vmem:[%s2352_s18 + $0x8] sm:$0xe] }
  0xab   : > { %v1226_v58 = vor.u32 %v1225_v47, %v1222_v45 }
  0xad   : > { %1008 = vrot.lane.b32.xlu2 %v969_v49, %s2311_s22  ;;  %1000 = vrot.lane.b32.xlu1 %v965_v50, %s2311_s22  ;;  %v2862_v50 = vld [vmem:[%s2352_s18 + $0x3c] sm:$0xf]  ;;  %v1227_v60 = vrot.slane %v1226_v58, 4 }
  0xae   : > { %1450 = vrot.lane.b32.xlu0 %v1418_v30, %s2312_s23  ;;  %v2865_v30 = vld [vmem:[%s2352_s18 + $0x2c] sm:$0xf]  ;;  %v1421_v61 = vrot.slane %v2862_v50, 5 }
  0xaf   : > { %v660_v1 = vpop.permute.xlu2 %659  ;;  %v640_v2 = vpop.permute.xlu1 %639  ;;  %v1411_v6 = vrot.slane %v2865_v30, 5  ;;  %v1232_v62 = vsel %vm2854_vm0, %v1227_v60, %v2763_v18 }
  0xb0   : > { %699 = vst.msk [vmem:[#allocation2 + $0x28] sm:$0xe] %vm687_vm9, %v660_v1  ;;  %v510_v4 = vpop.permute.xlu0 %509  ;;  %v1529_v1 = vld [vmem:[%s2352_s18 + $0x30] sm:$0xe] }
  0xb1   : > { %688 = vst.msk [vmem:[#allocation2] sm:$0xe] %vm687_vm9, %v640_v2  ;;  %v1525_v2 = vld [vmem:[%s2352_s18 + $0x20] sm:$0xe]  ;;  %v1651_v13 = vshrl.u32 %v1529_v1, 16  ;;  %v1654_v15 = vshll.u32 %v1529_v1, 16 }
  0xb2   : > { %562 = vst.msk [vmem:[#allocation2 + $0x3c] sm:$0xf] %vm533_vm7, %v510_v4  ;;  %v1423_v4 = vrot.slane %v1421_v61, 4  ;;  %v1613_v20 = vshrl.u32 %v1525_v2, 16  ;;  %v1616_v22 = vshll.u32 %v1525_v2, 16  ;;  %vm2919_vm7 = vmor %vm1533_vm5, %vm1534_vm6 }
  0xb3   : > { %v1093_v1 = vld [vmem:[%s2352_s18 + $0x1c] sm:$0xf]  ;;  %v1089_v2 = vld [vmem:[%s2352_s18 + $0xc] sm:$0xf]  ;;  %vm1491_vm6 = vsmask.f32 7946 }
  0xb4   : > { %v1618_v31 = vrot.slane %v1616_v22, 6 }
  0xb5   : > { %1426 = vrot.lane.b32.xlu2 %v1388_v7, %s2312_s23  ;;  %1267 = vrot.lane.b32.xlu1 %v1161_v8, %s2313_s24  ;;  %v1413_v7 = vrot.slane %v1411_v6, 4  ;;  %v1624_v8 = vrot.slane %v1622_v37, 5 }
  0xb6   : > { %1259 = vrot.lane.b32.xlu0 %v1123_v9, %s2313_s24  ;;  %v1530_v9 = vld [vmem:[%s2352_s18 + $0x34] sm:$0xf] }
  0xb7   : > { %v666_v27 = vpop.permute.xlu2 %665  ;;  %v646_v54 = vpop.permute.xlu1 %645  ;;  %v1663_v24 = vshll.u32 %v1530_v9, 16 }
  0xb8   : > { %702 = vst.msk [vmem:[#allocation2 + $0x34] sm:$0xf] %vm689_vm8, %v666_v27  ;;  %v644_v14 = vpop.permute.xlu0 %643  ;;  %v929_v41 = vld [vmem:[#allocation2] sm:$0xf]  ;;  %v1628_v27 = vor.u32 %v1627_v12, %v1624_v8  ;;  %v1172_v12 = vshll.u32 %v1093_v1, 16 }
  0xb9   : > { %692 = vst.msk [vmem:[#allocation2 + $0xc] sm:$0xf] %vm689_vm8, %v646_v54  ;;  %v2200_v54 = vrot.slane %v1361_v39, 9  ;;  %v1788_v8 = vld [vmem:[%s2352_s18 + $0x20] sm:$0xc]  ;;  %v1176_v39 = vshrl.u32 %v1093_v1, 16 }
  0xba   : > { %691 = vst.msk [vmem:[#allocation2 + $0x8] sm:$0xe] %vm687_vm9, %v644_v14  ;;  %v1660_v14 = vshrl.u32 %v1530_v9, 16  ;;  %v1630_v45 = vrot.slane %v1628_v27, 4  ;;  %v1134_v9 = vshll.u32 %v1089_v2, 16 }
  0xbc   : > { %v1662_v47 = vrot.slane %v1660_v14, 5  ;;  %v1086_v14 = vld [vmem:[%s2352_s18] sm:$0xf] }
  0xbd   : > { %1287 = vrot.lane.b32.xlu2 %v1256_v16, %s2313_s24  ;;  %1279 = vrot.lane.b32.xlu1 %v1218_v28, %s2313_s24  ;;  %v1653_v16 = vrot.slane %v1651_v13, 5  ;;  %v1656_v28 = vrot.slane %v1654_v15, 6  ;;  %v1138_v13 = vshrl.u32 %v1089_v2, 16 }
  0xbe   : > { %1434 = vrot.lane.b32.xlu0 %v1398_v29, %s2312_s23  ;;  %v1615_v29 = vrot.slane %v1613_v20, 5 }
  0xbf   : > { %v879_v40 = vpop.permute.xlu2 %878  ;;  %v652_v43 = vpop.permute.xlu1 %651  ;;  %v1657_v46 = vor.u32 %v1656_v28, %v1653_v16 }
  0xc0   : > { %v930_v48 = vsel %vm2848_vm15, %v879_v40, %v929_v41  ;;  %695 = vst.msk [vmem:[#allocation2 + $0x18] sm:$0xe] %vm687_vm9, %v652_v43  ;;  %v650_v49 = vpop.permute.xlu0 %649  ;;  %v2198_v40 = vrot.slane %v1357_v25, 9 }
  0xc1   : > { %931 = vst [vmem:[#allocation2] sm:$0xf] %v930_v48  ;;  %v1665_v48 = vrot.slane %v1663_v24, 6  ;;  %v934_v15 = vld [vmem:[#allocation2 + $0x8] sm:$0xf] }
  0xc2   : > { %694 = vst.msk [vmem:[#allocation2 + $0x14] sm:$0xf] %vm689_vm8, %v650_v49  ;;  %v1417_v49 = vsel %vm2899_vm4, %v2200_v54, %v1416_v35  ;;  %v1658_v35 = vrot.slane %v1657_v46, 4  ;;  %v2206_v54 = vrot.slane %v1788_v8, 10 }
  0xc3   : > { %v1666_v32 = vor.u32 %v1665_v48, %v1662_v47 }
  0xc5   : > { %1273 = vrot.lane.b32.xlu2 %v1194_v52, %s2313_s24  ;;  %1018 = vrot.lane.b32.xlu1 %v974_v56, %s2311_s22  ;;  %v1619_v52 = vor.u32 %v1618_v31, %v1615_v29  ;;  %v1407_v56 = vsel %vm2899_vm4, %v2198_v40, %v1406_v53  ;;  %v1668_v11 = vrot.slane %v1666_v32, 4  ;;  %v2944_v31 = vrot.slane %v1172_v12, 5 }
  0xc6   : > { %1010 = vrot.lane.b32.xlu0 %v970_v57, %s2311_s22 }
  0xc7   : > { %v885_v63 = vpop.permute.xlu2 %884  ;;  %v658_v0 = vpop.permute.xlu1 %657  ;;  %v942_v33 = vld [vmem:[#allocation2 + $0x18] sm:$0xf]  ;;  %v1620_v21 = vrot.slane %v1619_v52, 4 }
  0xc8   : > { %937 = vst.msk [vmem:[#allocation2 + $0xc] sm:$0xf] %vm926_vm10, %v885_v63  ;;  %v656_v3 = vpop.permute.xlu0 %655  ;;  %v1789_v63 = vld [vmem:[%s2352_s18 + $0x24] sm:$0xf] }
  0xc9   : > { %698 = vst.msk [vmem:[#allocation2 + $0x24] sm:$0xf] %vm689_vm8, %v658_v0  ;;  %v1667_v0 = vsel %vm2919_vm7, %v1658_v35, %v1666_v32  ;;  %v1629_v60 = vsel %vm2919_vm7, %v1620_v21, %v1628_v27  ;;  %v938_v35 = vld [vmem:[#allocation2 + $0x10] sm:$0xf] }
  0xca   : > { %697 = vst.msk [vmem:[#allocation2 + $0x20] sm:$0xe] %vm687_vm9, %v656_v3  ;;  %v1792_v3 = vld [vmem:[%s2352_s18 + $0x30] sm:$0xc] }
  0xcb   : > { %v2208_v20 = vrot.slane %v1792_v3, 10  ;;  %v1090_v21 = vld [vmem:[%s2352_s18 + $0x10] sm:$0xf] }
  0xcd   : > { %1454 = vrot.lane.b32.xlu2 %v1423_v4, %s2312_s23  ;;  %1446 = vrot.lane.b32.xlu1 %v1413_v7, %s2312_s23  ;;  %v1793_v4 = vld [vmem:[%s2352_s18 + $0x34] sm:$0xf]  ;;  %v1834_v7 = vrot.slane %v1789_v63, 6 }
  0xce   : > { %1281 = vrot.lane.b32.xlu0 %v1232_v62, %s2313_s24  ;;  %v1844_v22 = vrot.slane %v1793_v4, 6 }
  0xcf   : > { %v891_v26 = vpop.permute.xlu2 %890  ;;  %v664_v18 = vpop.permute.xlu1 %663  ;;  %v1836_v29 = vrot.slane %v1834_v7, 4 }
  0xd0   : > { %v943_v41 = vsel %vm2848_vm15, %v891_v26, %v942_v33  ;;  %701 = vst.msk [vmem:[#allocation2 + $0x30] sm:$0xe] %vm687_vm9, %v664_v18  ;;  %v662_v43 = vpop.permute.xlu0 %661  ;;  %v1178_v26 = vrot.slane %v1176_v39, 4  ;;  %v2946_v33 = vrot.slane %v1134_v9, 5  ;;  %v1140_v18 = vrot.slane %v1138_v13, 4 }
  0xd1   : > { %944 = vst [vmem:[#allocation2 + $0x18] sm:$0xf] %v943_v41  ;;  %v1845_v40 = vsel %vm2537_vm1, %v2208_v20, %v1844_v22  ;;  %v1106_v41 = vshrl.u32 %v1086_v14, 16  ;;  %v2975_v20 = vld [vmem:[%s2352_s18 + $0xc] sm:$0xf] }
  0xd2   : > { %700 = vst.msk [vmem:[#allocation2 + $0x2c] sm:$0xf] %vm689_vm8, %v662_v43  ;;  %v1109_v43 = vshll.u32 %v1086_v14, 16  ;;  %v1179_v47 = vor.u32 %v1178_v26, %v2944_v31  ;;  %v1141_v48 = vor.u32 %v1140_v18, %v2946_v33  ;;  %v1521_v18 = vld [vmem:[%s2352_s18 + $0x10] sm:$0xe] }
  0xd4   : > { %v1111_v46 = vrot.slane %v1109_v43, 5  ;;  %v950_v43 = vld [vmem:[#allocation2 + $0x28] sm:$0xf] }
  0xd5   : > { %1706 = vrot.lane.b32.xlu2 %v1630_v45, %s2314_s25  ;;  %1448 = vrot.lane.b32.xlu1 %v1417_v49, %s2312_s23  ;;  %v1835_v45 = vsel %vm2537_vm1, %v2206_v54, %v1834_v7  ;;  %v1108_v49 = vrot.slane %v1106_v41, 4  ;;  %v946_v7 = vld [vmem:[#allocation2 + $0x20] sm:$0xf] }
  0xd6   : > { %1440 = vrot.lane.b32.xlu0 %v1407_v56, %s2312_s23 }
  0xd7   : > { %v897_v57 = vpop.permute.xlu2 %896  ;;  %v670_v53 = vpop.permute.xlu1 %669  ;;  %v954_v25 = vld [vmem:[#allocation2 + $0x30] sm:$0xf]  ;;  %v1112_v63 = vor.u32 %v1111_v46, %v1108_v49 }
  0xd8   : > { %949 = vst.msk [vmem:[#allocation2 + $0x24] sm:$0xf] %vm926_vm10, %v897_v57  ;;  %v668_v37 = vpop.permute.xlu0 %667 }
  0xd9   : > { %704 = vst.msk [vmem:[#allocation2 + $0x3c] sm:$0xf] %vm689_vm8, %v670_v53  ;;  %v1180_v53 = vrot.slane %v1179_v47, 4  ;;  %v1113_v1 = vrot.slane %v1112_v63, 4  ;;  %vm1042_vm8 = vcmask 158848  }
  0xda   : > { %703 = vst.msk [vmem:[#allocation2 + $0x38] sm:$0xe] %vm687_vm9, %v668_v37  ;;  %v1142_v37 = vrot.slane %v1141_v48, 4  ;;  %vm1059_vm9 = vcmask 191651  }
  0xdb   : > { %vm3023_vm13 = vmand %vm1059_vm9, %vm1060_vm11  ;;  %vm1738_vm11 = vcmask 256224  }
  0xdc   : > { %vm3132_vm9 = vmand %vm1490_vm3, %vm1491_vm6  ;;  %vm1771_vm3 = vcmask 290050   ;;  %vm1900_vm6 = vcmask 290048  }
  0xdd   : > { %1712 = vrot.lane.b32.xlu2 %v1667_v0, %s2314_s25  ;;  %1704 = vrot.lane.b32.xlu1 %v1629_v60, %s2314_s25  ;;  %v1144_v0 = vshrl.u32 %v1090_v21, 16  ;;  %v1147_v60 = vshll.u32 %v1090_v21, 16  ;;  %v1578_v21 = vshll.u32 %v1521_v18, 16 }
  0xde   : > { %1714 = vrot.lane.b32.xlu0 %v1668_v11, %s2314_s25  ;;  %v1846_v11 = vrot.slane %v1844_v22, 4  ;;  %v1118_v22 = vsel %vm2854_vm0, %v1113_v1, %v2810_v55 }
  0xdf   : > { %v903_v62 = vpop.permute.xlu2 %902  ;;  %v883_v27 = vpop.permute.xlu1 %882  ;;  %v1146_v8 = vrot.slane %v1144_v0, 4  ;;  %v1149_v12 = vrot.slane %v1147_v60, 5 }
  0xe0   : > { %v955_v24 = vsel %vm2848_vm15, %v903_v62, %v954_v25  ;;  %v935_v16 = vsel %vm2848_vm15, %v883_v27, %v934_v15  ;;  %v881_v28 = vpop.permute.xlu0 %880  ;;  %v2972_v15 = vld [vmem:[%s2352_s18 + $0x1c] sm:$0xf]  ;;  %v966_v62 = vld [vmem:[%s2352_s18 + $0x10] sm:$0xf]  ;;  %v1518_v25 = vld [vmem:[%s2352_s18 + $0x4] sm:$0xf] }
  0xe1   : > { %956 = vst [vmem:[#allocation2 + $0x30] sm:$0xf] %v955_v24  ;;  %v958_v3 = vld [vmem:[#allocation2 + $0x38] sm:$0xf]  ;;  %v962_v27 = vld [vmem:[%s2352_s18] sm:$0xf]  ;;  %v1150_v54 = vor.u32 %v1149_v12, %v1146_v8 }
  0xe2   : > { %936 = vst [vmem:[#allocation2 + $0x8] sm:$0xf] %v935_v16  ;;  %v1401_v14 = vrot.slane %v2972_v15, 5  ;;  %v1391_v24 = vrot.slane %v2975_v20, 5  ;;  %v1546_v16 = vshrl.u32 %v1518_v25, 16 }
  0xe3   : > { %933 = vst.msk [vmem:[#allocation2 + $0x4] sm:$0xf] %vm926_vm10, %v881_v28  ;;  %v1549_v28 = vshll.u32 %v1518_v25, 16  ;;  %v1151_v26 = vrot.slane %v1150_v54, 4 }
  0xe4   : > { %v1393_v47 = vrot.slane %v1391_v24, 4  ;;  %v1548_v49 = vrot.slane %v1546_v16, 5 }
  0xe5   : > { %1876 = vrot.lane.b32.xlu2 %v1845_v40, %s2315_s26  ;;  %1870 = vrot.lane.b32.xlu1 %v1836_v29, %s2315_s26  ;;  %v1517_v40 = vld [vmem:[%s2352_s18] sm:$0xe]  ;;  %v1551_v46 = vrot.slane %v1549_v28, 6 }
  0xe6   : > { %1868 = vrot.lane.b32.xlu0 %v1835_v45, %s2315_s26  ;;  %v1403_v45 = vrot.slane %v1401_v14, 4 }
  0xe7   : > { %v2958_v52 = vpop.permute.xlu2 %1020  ;;  %v889_v56 = vpop.permute.xlu1 %888  ;;  %v1552_v34 = vor.u32 %v1551_v46, %v1548_v49  ;;  %v1780_v49 = vld [vmem:[%s2352_s18] sm:$0xc] }
  0xe8   : > { %941 = vst.msk [vmem:[#allocation2 + $0x14] sm:$0xf] %vm926_vm10, %v889_v56  ;;  %v887_v32 = vpop.permute.xlu0 %886  ;;  %v1353_v56 = vld [vmem:[%s2352_s18 + $0x10] sm:$0xe] }
  0xe9   : > { %v939_v57 = vsel %vm2848_vm15, %v887_v32, %v938_v35  ;;  %v1522_v32 = vld [vmem:[%s2352_s18 + $0x14] sm:$0xf]  ;;  %v1575_v35 = vshrl.u32 %v1521_v18, 16  ;;  %v2196_v63 = vrot.slane %v1353_v56, 9 }
  0xea   : > { %940 = vst [vmem:[#allocation2 + $0x10] sm:$0xf] %v939_v57  ;;  %v1537_v57 = vshrl.u32 %v1517_v40, 16  ;;  %v1584_v0 = vshrl.u32 %v1522_v32, 16  ;;  %v1587_v60 = vshll.u32 %v1522_v32, 16 }
  0xeb   : > { %v1577_v1 = vrot.slane %v1575_v35, 5 }
  0xed   : > { %1271 = vrot.lane.b32.xlu2 %v1180_v53, %s2313_s24  ;;  %1263 = vrot.lane.b32.xlu1 %v1142_v37, %s2313_s24  ;;  %v1540_v53 = vshll.u32 %v1517_v40, 16  ;;  %v1156_v37 = vsel %vm2854_vm0, %v1151_v26, %v2802_v42  ;;  %v1781_v26 = vld [vmem:[%s2352_s18 + $0x4] sm:$0xf]  ;;  %v1784_v40 = vld [vmem:[%s2352_s18 + $0x10] sm:$0xc] }
  0xee   : > { %1878 = vrot.lane.b32.xlu0 %v1846_v11, %s2315_s26  ;;  %v1349_v11 = vld [vmem:[%s2352_s18] sm:$0xe]  ;;  %v2204_v46 = vrot.slane %v1784_v40, 10  ;;  %v1814_v32 = vrot.slane %v1781_v26, 6  ;;  %v972_v40 = vld [vmem:[%s2352_s18 + $0x28] sm:$0xf] }
  0xef   : > { %v907_v2 = vpop.permute.xlu2 %906  ;;  %v895_v4 = vpop.permute.xlu1 %894  ;;  %v2194_v42 = vrot.slane %v1349_v11, 9 }
  0xf0   : > { %v959_v39 = vsel %vm2848_vm15, %v907_v2, %v958_v3  ;;  %v947_v9 = vsel %vm2848_vm15, %v895_v4, %v946_v7  ;;  %v893_v13 = vpop.permute.xlu0 %892  ;;  %v1580_v2 = vrot.slane %v1578_v21, 6  ;;  %v1539_v3 = vrot.slane %v1537_v57, 5 }
  0xf1   : > { %960 = vst [vmem:[#allocation2 + $0x38] sm:$0xf] %v959_v39  ;;  %v1542_v4 = vrot.slane %v1540_v53, 6  ;;  %v1554_v39 = vrot.slane %v1552_v34, 4  ;;  %v2202_v53 = vrot.slane %v1780_v49, 10 }
  0xf2   : > { %948 = vst [vmem:[#allocation2 + $0x20] sm:$0xf] %v947_v9  ;;  %v1397_v9 = vsel %vm2899_vm4, %v2196_v63, %v1396_v23  ;;  %v1096_v63 = vld [vmem:[%s2352_s18 + $0x28] sm:$0xf] }
  0xf3   : > { %945 = vst.msk [vmem:[#allocation2 + $0x1c] sm:$0xf] %vm926_vm10, %v893_v13  ;;  %v1581_v13 = vor.u32 %v1580_v2, %v1577_v1  ;;  %v1543_v25 = vor.u32 %v1542_v4, %v1539_v3  ;;  %v1816_v1 = vrot.slane %v1814_v32, 4 }
  0xf5   : > { %1257 = vrot.lane.b32.xlu2 %v1118_v22, %s2313_s24  ;;  %1002 = vrot.lane.b32.xlu1 %v966_v62, %s2311_s22  ;;  %v1586_v22 = vrot.slane %v1584_v0, 5  ;;  %v1589_v62 = vrot.slane %v1587_v60, 6  ;;  %v1582_v19 = vrot.slane %v1581_v13, 4 }
  0xf6   : > { %994 = vrot.lane.b32.xlu0 %v962_v27, %s2311_s22  ;;  %v1387_v27 = vsel %vm2899_vm4, %v2194_v42, %v1386_v59  ;;  %v1815_v42 = vsel %vm2537_vm1, %v2202_v53, %v1814_v32 }
  0xf7   : > { %v2989_v55 = vpop.permute.xlu2 %1024  ;;  %v901_v29 = vpop.permute.xlu1 %900  ;;  %v1590_v23 = vor.u32 %v1589_v62, %v1586_v22 }
  0xf8   : > { %953 = vst.msk [vmem:[#allocation2 + $0x2c] sm:$0xf] %vm926_vm10, %v901_v29  ;;  %v899_v41 = vpop.permute.xlu0 %898 }
  0xf9   : > { %v951_v48 = vsel %vm2848_vm15, %v899_v41, %v950_v43  ;;  %v1591_v43 = vsel %vm2919_vm7, %v1582_v19, %v1590_v23  ;;  %vm1305_vm15 = vcmask 191648  }
  0xfa   : > { %952 = vst [vmem:[#allocation2 + $0x28] sm:$0xf] %v951_v48  ;;  %v1785_v48 = vld [vmem:[%s2352_s18 + $0x14] sm:$0xf] }
  0xfb   : > { %v1824_v56 = vrot.slane %v1785_v48, 6  ;;  %v1359_v48 = vld [vmem:[%s2352_s18 + $0x28] sm:$0xe] }
  0xfc   : > { %v2199_v53 = vrot.slane %v1359_v48, 9 }
  0xfd   : > { %1438 = vrot.lane.b32.xlu2 %v1403_v45, %s2312_s23  ;;  %1430 = vrot.lane.b32.xlu1 %v1393_v47, %s2312_s23  ;;  %v1592_v47 = vrot.slane %v1590_v23, 4  ;;  %v1825_v60 = vsel %vm2537_vm1, %v2204_v46, %v1824_v56 }
  0xfe   : > { %1265 = vrot.lane.b32.xlu0 %v1156_v37, %s2313_s24  ;;  %v1100_v37 = vld [vmem:[%s2352_s18 + $0x38] sm:$0xf] }
  0xff   : > { %v3009_v7 = vpop.permute.xlu2 %1442  ;;  %v1013_v8 = vpop.permute.xlu1 %1012  ;;  %v1239_v3 = vshrl.u32 %v1100_v37, 16  ;;  %v1242_v4 = vshll.u32 %v1100_v37, 16 }
 0x100   : > { %1052 = vst.msk [vmem:[#allocation2 + $0x24] sm:$0xf] %vm1042_vm8, %v1013_v8  ;;  %v905_v12 = vpop.permute.xlu0 %904 }
 0x101   : > { %957 = vst.msk [vmem:[#allocation2 + $0x34] sm:$0xf] %vm926_vm10, %v905_v12  ;;  %v1201_v12 = vshrl.u32 %v1096_v63, 16  ;;  %v1241_v22 = vrot.slane %v1239_v3, 4  ;;  %v1244_v62 = vrot.slane %v1242_v4, 5 }
 0x102   : > { %1056 = vst.msk [vmem:[#allocation2 + $0x34] sm:$0xf] %vm1042_vm8, %v2958_v52  ;;  %v1544_v52 = vrot.slane %v1543_v25, 4 }
 0x103   : > { %v1203_v23 = vrot.slane %v1201_v12, 4  ;;  %v1363_v12 = vld [vmem:[%s2352_s18 + $0x38] sm:$0xe] }
 0x104   : > { %v1553_v45 = vsel %vm2919_vm7, %v1544_v52, %v1552_v34 }
 0x105   : > { %1690 = vrot.lane.b32.xlu2 %v1554_v39, %s2314_s25  ;;  %1432 = vrot.lane.b32.xlu1 %v1397_v9, %s2312_s23  ;;  %v1204_v39 = vshll.u32 %v1096_v63, 16 }
 0x106   : > { %1424 = vrot.lane.b32.xlu0 %v1387_v27, %s2312_s23 }
 0x107   : > { %v1074_v16 = vld [vmem:[#allocation2 + $0x24] sm:$0x8]  ;;  %v1009_v51 = vpop.permute.xlu2 %1008  ;;  %v1005_v28 = vpop.permute.xlu1 %1004  ;;  %v1206_v52 = vrot.slane %v1204_v39, 5 }
 0x108   : > { %v1075_v59 = vsel %vm3023_vm13, 0, %v1074_v16  ;;  %1050 = vst.msk [vmem:[#allocation2 + $0x1c] sm:$0xf] %vm1042_vm8, %v1009_v51  ;;  %v997_v29 = vpop.permute.xlu0 %996 }
 0x109   : > { %1076 = vst [vmem:[#allocation2 + $0x24] sm:$0x8] %v1075_v59  ;;  %v1080_v18 = vld [vmem:[#allocation2 + $0x34] sm:$0x8]  ;;  %v1207_v49 = vor.u32 %v1206_v52, %v1203_v23  ;;  %v2201_v23 = vrot.slane %v1363_v12, 9 }
 0x10a   : > { %v1081_v41 = vsel %vm3023_vm13, 0, %v1080_v18  ;;  %1048 = vst.msk [vmem:[#allocation2 + $0x14] sm:$0xf] %vm1042_vm8, %v1005_v28  ;;  %v976_v18 = vld [vmem:[%s2352_s18 + $0x38] sm:$0xf] }
 0x10b   : > { %1082 = vst [vmem:[#allocation2 + $0x34] sm:$0x8] %v1081_v41  ;;  %v1245_v41 = vor.u32 %v1244_v62, %v1241_v22  ;;  %v1208_v63 = vrot.slane %v1207_v49, 4  ;;  %v1795_v12 = vld [vmem:[%s2352_s18 + $0x3c] sm:$0xf] }
 0x10c   : > { %1044 = vst.msk [vmem:[#allocation2 + $0x4] sm:$0xf] %vm1042_vm8, %v997_v29  ;;  %v1826_v29 = vrot.slane %v1824_v56, 4 }
 0x10d   : > { %1696 = vrot.lane.b32.xlu2 %v1591_v43, %s2314_s25  ;;  %1688 = vrot.lane.b32.xlu1 %v1553_v45, %s2314_s25  ;;  %v1532_v43 = vld [vmem:[%s2352_s18 + $0x3c] sm:$0xf]  ;;  %v1528_v45 = vld [vmem:[%s2352_s18 + $0x2c] sm:$0xf]  ;;  %v1246_v37 = vrot.slane %v1245_v41, 4  ;;  %v1213_v22 = vsel %vm2854_vm0, %v1208_v63, %v2827_v36 }
 0x10e   : > { %1698 = vrot.lane.b32.xlu0 %v1592_v47, %s2314_s25  ;;  %v1679_v56 = vshrl.u32 %v1532_v43, 16  ;;  %v1682_v32 = vshll.u32 %v1532_v43, 16 }
 0x10f   : > { %v1071_v35 = vld [vmem:[#allocation2 + $0x1c] sm:$0x8]  ;;  %v3048_v21 = vpop.permute.xlu2 %1426  ;;  %v1017_v57 = vpop.permute.xlu1 %1016 }
 0x110   : > { %v1072_v11 = vsel %vm3023_vm13, 0, %v1071_v35  ;;  %1054 = vst.msk [vmem:[#allocation2 + $0x2c] sm:$0xf] %vm1042_vm8, %v1017_v57  ;;  %v909_v34 = vpop.permute.xlu0 %908  ;;  %v1325_v59 = vld [vmem:[#allocation2 + $0x24] sm:$0xf]  ;;  %v1641_v35 = vshrl.u32 %v1528_v45, 16 }
 0x111   : > { %1073 = vst [vmem:[#allocation2 + $0x1c] sm:$0x8] %v1072_v11  ;;  %v1068_v0 = vld [vmem:[#allocation2 + $0x14] sm:$0x8]  ;;  %v1644_v57 = vshll.u32 %v1528_v45, 16 }
 0x112   : > { %v1069_v2 = vsel %vm3023_vm13, 0, %v1068_v0  ;;  %961 = vst.msk [vmem:[#allocation2 + $0x3c] sm:$0xf] %vm926_vm10, %v909_v34  ;;  %vm3070_vm10 = vmand %vm1305_vm15, %vm1102_vm12  ;;  %v1333_v19 = vld [vmem:[#allocation2 + $0x34] sm:$0xf]  ;;  %vm1474_vm12 = vcmask 223424  }
 0x113   : > { %1070 = vst [vmem:[#allocation2 + $0x14] sm:$0x8] %v1069_v2  ;;  %v1062_v8 = vld [vmem:[#allocation2 + $0x4] sm:$0x8]  ;;  %v1531_v0 = vld [vmem:[%s2352_s18 + $0x38] sm:$0xe] }
 0x114   : > { %v1063_v9 = vsel %vm3023_vm13, 0, %v1062_v8  ;;  %1058 = vst.msk [vmem:[#allocation2 + $0x3c] sm:$0xf] %vm1042_vm8, %v2989_v55  ;;  %v1684_v2 = vrot.slane %v1682_v32, 6  ;;  %v1643_v3 = vrot.slane %v1641_v35, 5  ;;  %v1646_v4 = vrot.slane %v1644_v57, 6 }
 0x115   : > { %1064 = vst [vmem:[#allocation2 + $0x4] sm:$0x8] %v1063_v9  ;;  %1860 = vrot.lane.b32.xlu2 %v1825_v60, %s2315_s26  ;;  %1854 = vrot.lane.b32.xlu1 %v1816_v1, %s2315_s26  ;;  %v1527_v1 = vld [vmem:[%s2352_s18 + $0x28] sm:$0xe]  ;;  %v1412_v8 = vsel %vm2899_vm4, %v2199_v53, %v1411_v6  ;;  %v1670_v39 = vshrl.u32 %v1531_v0, 16  ;;  %v1673_v9 = vshll.u32 %v1531_v0, 16 }
 0x116   : > { %1852 = vrot.lane.b32.xlu0 %v1815_v42, %s2315_s26  ;;  %v1251_v42 = vsel %vm2854_vm0, %v1246_v37, %v2825_v10  ;;  %v1632_v62 = vshrl.u32 %v1527_v1, 16  ;;  %v1791_v35 = vld [vmem:[%s2352_s18 + $0x2c] sm:$0xf]  ;;  %v1790_v53 = vld [vmem:[%s2352_s18 + $0x28] sm:$0xc] }
 0x117   : > { %v1077_v25 = vld [vmem:[#allocation2 + $0x2c] sm:$0x8]  ;;  %v3075_v55 = vpop.permute.xlu2 %1287  ;;  %v1284_v27 = vpop.permute.xlu1 %1283  ;;  %v1672_v52 = vrot.slane %v1670_v39, 5  ;;  %v2207_v37 = vrot.slane %v1790_v53, 10  ;;  %v1351_v53 = vld [vmem:[%s2352_s18 + $0x8] sm:$0xe] }
 0x118   : > { %v1078_v16 = vsel %vm3023_vm13, 0, %v1077_v25  ;;  %v1334_v51 = vsel %vm3070_vm10, %v1284_v27, %v1333_v19  ;;  %v1276_v28 = vpop.permute.xlu0 %1275  ;;  %v1635_v25 = vshll.u32 %v1527_v1, 16  ;;  %v3123_v19 = vor.u32 %v1646_v4, %v1643_v3 }
 0x119   : > { %1079 = vst [vmem:[#allocation2 + $0x2c] sm:$0x8] %v1078_v16  ;;  %v1326_v26 = vsel %vm3070_vm10, %v1276_v28, %v1325_v59  ;;  %v1675_v16 = vrot.slane %v1673_v9, 6  ;;  %v1634_v59 = vrot.slane %v1632_v62, 5  ;;  %v1938_v62 = vld [vmem:[%s3435_s1 + $0x10] sm:$0x3] }
 0x11a   : > { %1335 = vst [vmem:[#allocation2 + $0x34] sm:$0xf] %v1334_v51  ;;  %v1317_v10 = vld [vmem:[#allocation2 + $0x14] sm:$0xf]  ;;  %v1649_v48 = vrot.slane %v3123_v19, 4 }
 0x11b   : > { %v1083_v47 = vld [vmem:[#allocation2 + $0x3c] sm:$0x8]  ;;  %1327 = vst [vmem:[#allocation2 + $0x24] sm:$0xf] %v1326_v26 }
 0x11c   : > { %v1084_v46 = vsel %vm3023_vm13, 0, %v1083_v47  ;;  %1345 = vst.msk [vmem:[#allocation2 + $0x24] sm:$0x8] %vm1340_vm2, %v2309_v17  ;;  %v1309_v36 = vld [vmem:[#allocation2 + $0x4] sm:$0xf] }
 0x11d   : > { %1085 = vst [vmem:[#allocation2 + $0x3c] sm:$0x8] %v1084_v46  ;;  %1022 = vrot.lane.b32.xlu2 %v976_v18, %s2311_s22  ;;  %1014 = vrot.lane.b32.xlu1 %v972_v40, %s2311_s22  ;;  %v1676_v46 = vor.u32 %v1675_v16, %v1672_v52 }
 0x11e   : > { %1483 = vst.msk [vmem:[#allocation2 + $0x24] sm:$0x7] %vm1474_vm12, %v3009_v7  ;;  %1862 = vrot.lane.b32.xlu0 %v1826_v29, %s2315_s26  ;;  %v1681_v7 = vrot.slane %v1679_v56, 5  ;;  %v1637_v29 = vrot.slane %v1635_v25, 6  ;;  %v1422_v56 = vsel %vm2899_vm4, %v2201_v23, %v1421_v61 }
 0x11f   : > { %1347 = vst.msk [vmem:[#allocation2 + $0x34] sm:$0x8] %vm1340_vm2, %v2309_v17  ;;  %v3099_v11 = vpop.permute.xlu2 %1273  ;;  %v1001_v34 = vpop.permute.xlu1 %1000  ;;  %v1677_v61 = vrot.slane %v1676_v46, 4  ;;  %v2271_v46 = vld [vmem:[%s3435_s1 + $0x8] sm:$0xff] }
 0x120   : > { %1046 = vst.msk [vmem:[#allocation2 + $0xc] sm:$0xf] %vm1042_vm8, %v1001_v34  ;;  %v1451_v60 = vpop.permute.xlu0 %1450  ;;  %v3121_v6 = vor.u32 %v1684_v2, %v1681_v7  ;;  %v1638_v32 = vor.u32 %v1637_v29, %v1634_v59  ;;  %v1329_v50 = vld [vmem:[#allocation2 + $0x2c] sm:$0xf]  ;;  %v1839_v2 = vrot.slane %v1791_v35, 6 }
 0x121   : > { %1487 = vst.msk [vmem:[#allocation2 + $0x34] sm:$0x7] %vm1474_vm12, %v1451_v60  ;;  %v1524_v35 = vld [vmem:[%s2352_s18 + $0x1c] sm:$0xf] }
 0x122   : > { %v1687_v47 = vrot.slane %v3121_v6, 4  ;;  %v1639_v60 = vrot.slane %v1638_v32, 4  ;;  %v1686_v3 = vsel %vm2919_vm7, %v1677_v61, %v3121_v6  ;;  %v1840_v4 = vsel %vm2537_vm1, %v2207_v37, %v1839_v2  ;;  %v964_v32 = vld [vmem:[%s2352_s18 + $0x8] sm:$0xf]  ;;  %v1520_v61 = vld [vmem:[%s2352_s18 + $0xc] sm:$0xf] }
 0x123   : > { %v1988_v6 = vunpack.c.l.b16 %v1938_v62 }
 0x124   : > { %v1337_v27 = vld [vmem:[#allocation2 + $0x3c] sm:$0xf] }
 0x125   : > { %v1338_v30 = vsel %vm3070_vm10, %v3075_v55, %v1337_v27  ;;  %1444 = vrot.lane.b32.xlu2 %v1412_v8, %s2312_s23  ;;  %1285 = vrot.lane.b32.xlu1 %v1251_v42, %s2313_s24  ;;  %v1505_v49 = vld [vmem:[#allocation2 + $0x24] sm:$0xc]  ;;  %v1648_v8 = vsel %vm2919_vm7, %v1639_v60, %v3123_v19  ;;  %v1794_v42 = vld [vmem:[%s2352_s18 + $0x38] sm:$0xc]  ;;  %v1991_v16 = vpack.c.b16 %v1988_v6, %v1988_v6  ;;  %v1606_v60 = vshll.u32 %v1524_v35, 16 }
 0x126   : > { %1339 = vst [vmem:[#allocation2 + $0x3c] sm:$0xf] %v1338_v30  ;;  %1277 = vrot.lane.b32.xlu0 %v1213_v22, %s2313_s24  ;;  %v1506_v57 = vsel %vm3132_vm9, 0, %v1505_v49  ;;  %v2209_v9 = vrot.slane %v1794_v42, 10  ;;  %v1849_v22 = vrot.slane %v1795_v12, 6 }
 0x127   : > { %1348 = vst.msk [vmem:[#allocation2 + $0x3c] sm:$0x8] %vm1340_vm2, %v2309_v17  ;;  %v1065_v55 = vld [vmem:[#allocation2 + $0xc] sm:$0x8]  ;;  %v1455_v51 = vpop.permute.xlu2 %1454  ;;  %v1268_v28 = vpop.permute.xlu1 %1267  ;;  %v968_v49 = vld [vmem:[%s2352_s18 + $0x18] sm:$0xf] }
 0x128   : > { %v1066_v26 = vsel %vm3023_vm13, 0, %v1065_v55  ;;  %v1511_v40 = vld [vmem:[#allocation2 + $0x34] sm:$0xc]  ;;  %1489 = vst.msk [vmem:[#allocation2 + $0x3c] sm:$0x7] %vm1474_vm12, %v1455_v51  ;;  %v1318_v41 = vsel %vm3070_vm10, %v1268_v28, %v1317_v10  ;;  %v1260_v43 = vpop.permute.xlu0 %1259  ;;  %vm3180_vm13 = vmand %vm1738_vm11, %vm1533_vm5  ;;  %v1851_v52 = vrot.slane %v1849_v22, 4  ;;  %v1850_v51 = vsel %vm2537_vm1, %v2209_v9, %v1849_v22 }
 0x129   : > { %1067 = vst [vmem:[#allocation2 + $0xc] sm:$0x8] %v1066_v26  ;;  %v1512_v45 = vsel %vm3132_vm9, 0, %v1511_v40  ;;  %v1310_v54 = vsel %vm3070_vm10, %v1260_v43, %v1309_v36  ;;  %v1092_v10 = vld [vmem:[%s2352_s18 + $0x18] sm:$0xf]  ;;  %v1841_v28 = vrot.slane %v1839_v2, 4 }
 0x12a   : > { %1513 = vst [vmem:[#allocation2 + $0x34] sm:$0xc] %v1512_v45  ;;  %v1163_v59 = vshrl.u32 %v1092_v10, 16  ;;  %v1166_v26 = vshll.u32 %v1092_v10, 16  ;;  %v2021_v40 = vsel %vm221_vm14, %v1991_v16, 0  ;;  %vm1472_vm14 = vcmask 224448  }
 0x12b   : > { %1319 = vst [vmem:[#allocation2 + $0x14] sm:$0xf] %v1318_v41  ;;  %2273 = vmatpush.bf16.msra.mxu2 %v2021_v40  ;;  %2274 = vmatpush.bf16.msra.mxu3 %v2021_v40  ;;  %vm1736_vm5 = vcmask 257248   ;;  %v1608_v6 = vrot.slane %v1606_v60, 6  ;;  %v1786_v60 = vld [vmem:[%s2352_s18 + $0x18] sm:$0xc] }
 0x12c   : > { %1311 = vst [vmem:[#allocation2 + $0x4] sm:$0xf] %v1310_v54  ;;  %2028 = vmatpush.bf16.msra.mxu0 %v2021_v40  ;;  %v1165_v54 = vrot.slane %v1163_v59, 4  ;;  %2272 = vmatpush.bf16.msra.mxu1 %v2021_v40  ;;  %v1559_v40 = vshll.u32 %v1519_v44, 16 }
 0x12d   : > { %1341 = vst.msk [vmem:[#allocation2 + $0x4] sm:$0x8] %vm1340_vm2, %v2309_v17  ;;  %1718 = vrot.lane.b32.xlu2 %v1687_v47, %s2314_s25  ;;  %1710 = vrot.lane.b32.xlu1 %v1649_v48, %s2314_s25  ;;  %v1168_v47 = vrot.slane %v1166_v26, 5  ;;  %v1088_v48 = vld [vmem:[%s2352_s18 + $0x8] sm:$0xf]  ;;  %v1556_v26 = vshrl.u32 %v1519_v44, 16 }
 0x12e   : > { %1475 = vst.msk [vmem:[#allocation2 + $0x4] sm:$0x7] %vm1474_vm12, %v3048_v21  ;;  %1452 = vrot.lane.b32.xlu0 %v1422_v56, %s2312_s23  ;;  %v1125_v56 = vshrl.u32 %v1088_v48, 16 }
 0x12f   : > { %v1514_v34 = vld [vmem:[#allocation2 + $0x3c] sm:$0xc]  ;;  %1343 = vst.msk [vmem:[#allocation2 + $0x14] sm:$0x8] %vm1340_vm2, %v2309_v17  ;;  %v1707_v63 = vpop.permute.xlu2 %1706  ;;  %v1280_v0 = vpop.permute.xlu1 %1279  ;;  %2276 = vmatpush.bf16.msra.mxu2 %v2271_v46  ;;  %2277 = vmatpush.bf16.msra.mxu3 %v2271_v46 }
 0x130   : > { %v1515_v1 = vsel %vm3132_vm9, 0, %v1514_v34  ;;  %1507 = vst [vmem:[#allocation2 + $0x24] sm:$0xc] %v1506_v57  ;;  %v1330_v21 = vsel %vm3070_vm10, %v1280_v0, %v1329_v50  ;;  %v1435_v7 = vpop.permute.xlu0 %1434  ;;  %v1128_v57 = vshll.u32 %v1088_v48, 16  ;;  %v1169_v50 = vor.u32 %v1168_v47, %v1165_v54  ;;  %v2270_v34 = vld [vmem:[%s3435_s1] sm:$0xff]  ;;  %2029 = vmatpush.bf16.msra.mxu0 %v2271_v46  ;;  %2275 = vmatpush.bf16.msra.mxu1 %v2271_v46 }
 0x131   : > { %1516 = vst [vmem:[#allocation2 + $0x3c] sm:$0xc] %v1515_v1  ;;  %v1127_v37 = vrot.slane %v1125_v56, 4  ;;  %v1603_v0 = vshrl.u32 %v1524_v35, 16  ;;  %v2195_v1 = vrot.slane %v1351_v53, 9  ;;  %v1561_v48 = vrot.slane %v1559_v40, 6 }
 0x132   : > { %1331 = vst [vmem:[#allocation2 + $0x2c] sm:$0xf] %v1330_v21  ;;  %v1565_v21 = vshrl.u32 %v1520_v61, 16  ;;  %v1170_v12 = vrot.slane %v1169_v50, 4  ;;  %v1782_v46 = vld [vmem:[%s2352_s18 + $0x8] sm:$0xc] }
 0x133   : > { %1479 = vst.msk [vmem:[#allocation2 + $0x14] sm:$0x7] %vm1474_vm12, %v1435_v7  ;;  %v1568_v7 = vshll.u32 %v1520_v61, 16  ;;  %2279 = vmatpush.bf16.msra.mxu2 %v2270_v34  ;;  %2280 = vmatpush.bf16.msra.mxu3 %v2270_v34  ;;  %v1605_v10 = vrot.slane %v1603_v0, 5  ;;  %v1783_v56 = vld [vmem:[%s2352_s18 + $0xc] sm:$0xf] }
 0x134   : > { %1346 = vst.msk [vmem:[#allocation2 + $0x2c] sm:$0x8] %vm1340_vm2, %v2309_v17  ;;  %2030 = vmatpush.bf16.msra.mxu0 %v2270_v34  ;;  %2278 = vmatpush.bf16.msra.mxu1 %v2270_v34  ;;  %v1819_v35 = vrot.slane %v1783_v56, 6 }
 0x135   : > { %1716 = vrot.lane.b32.xlu1 %v1686_v3, %s2314_s25  ;;  %1872 = vrot.lane.b32.xlu2 %v1840_v4, %s2315_s26  ;;  %v1493_v36 = vld [vmem:[#allocation2 + $0x4] sm:$0xc] }
 0x136   : > { %1708 = vrot.lane.b32.xlu0 %v1648_v8, %s2314_s25  ;;  %v1494_v41 = vsel %vm3132_vm9, 0, %v1493_v36  ;;  %v1321_v8 = vld [vmem:[#allocation2 + $0x1c] sm:$0xf]  ;;  %v1567_v36 = vrot.slane %v1565_v21, 5 }
 0x137   : > { %v1756_v25 = vld [vmem:[#allocation2 + $0x24] sm:$0x7]  ;;  %v3190_v27 = vpop.permute.xlu2 %1712  ;;  %v1019_v30 = vpop.permute.xlu1 %1018  ;;  %1495 = vst [vmem:[#allocation2 + $0x4] sm:$0xc] %v1494_v41 }
 0x138   : > { %v1757_v19 = vsel %vm3180_vm13, %v1707_v63, %v1756_v25  ;;  %1055 = vst.msk [vmem:[#allocation2 + $0x30] sm:$0xf] %vm1042_vm8, %v1019_v30  ;;  %v1011_v23 = vpop.permute.xlu0 %1010  ;;  %v1130_v63 = vrot.slane %v1128_v57, 5  ;;  %v1523_v30 = vld [vmem:[%s2352_s18 + $0x18] sm:$0xe] }
 0x139   : > { %1758 = vst [vmem:[#allocation2 + $0x24] sm:$0x7] %v1757_v19  ;;  %v1355_v19 = vld [vmem:[%s2352_s18 + $0x18] sm:$0xe]  ;;  %v1594_v20 = vshrl.u32 %v1523_v30, 16 }
 0x13a   : > { %1776 = vst.msk [vmem:[#allocation2 + $0x24] sm:$0xc] %vm1771_vm3, %v2309_v17  ;;  %v1499_v55 = vld [vmem:[#allocation2 + $0x14] sm:$0xc]  ;;  %v1131_v2 = vor.u32 %v1130_v63, %v1127_v37  ;;  %v1787_v63 = vld [vmem:[%s2352_s18 + $0x1c] sm:$0xf] }
 0x13b   : > { %v1500_v29 = vsel %vm3132_vm9, 0, %v1499_v55  ;;  %1051 = vst.msk [vmem:[#allocation2 + $0x20] sm:$0xf] %vm1042_vm8, %v1011_v23  ;;  %v1392_v23 = vsel %vm2899_vm4, %v2195_v1, %v1391_v24  ;;  %v1175_v55 = vsel %vm2854_vm0, %v1170_v12, %v2944_v31  ;;  %v2197_v24 = vrot.slane %v1355_v19, 9  ;;  %v1313_v12 = vld [vmem:[#allocation2 + $0xc] sm:$0xf] }
 0x13c   : > { %1501 = vst [vmem:[#allocation2 + $0x14] sm:$0xc] %v1500_v29  ;;  %v1132_v25 = vrot.slane %v1131_v2, 4  ;;  %v1596_v59 = vrot.slane %v1594_v20, 5  ;;  %v1829_v1 = vrot.slane %v1787_v63, 6 }
 0x13d   : > { %1324 = vst.msk [vmem:[#allocation2 + $0x20] sm:$0xf] %vm1305_vm15, %v3099_v11  ;;  %1880 = vrot.lane.b32.xlu1 %v1850_v51, %s2315_s26  ;;  %1882 = vrot.lane.b32.xlu2 %v1851_v52, %s2315_s26  ;;  %v1570_v52 = vrot.slane %v1568_v7, 6  ;;  %v1597_v51 = vshll.u32 %v1523_v30, 16  ;;  %v1402_v54 = vsel %vm2899_vm4, %v2197_v24, %v1401_v14  ;;  %v2203_v14 = vrot.slane %v1782_v46, 10 }
 0x13e   : > { %1874 = vrot.lane.b32.xlu0 %v1841_v28, %s2315_s26  ;;  %v1137_v16 = vsel %vm2854_vm0, %v1132_v25, %v2946_v33  ;;  %v1609_v33 = vor.u32 %v1608_v6, %v1605_v10  ;;  %vm1902_vm0 = vcmask 288000   ;;  %v1740_v2 = vld [vmem:[#allocation2 + $0x4] sm:$0x7]  ;;  %vm1994_vm4 = vcmask 293888  }
 0x13f   : > { %v3211_v43 = vpop.permute.xlu2 %1876  ;;  %v1447_v45 = vpop.permute.xlu1 %1446  ;;  %v1599_v29 = vrot.slane %v1597_v51, 6  ;;  %v1820_v34 = vsel %vm2537_vm1, %v2203_v14, %v1819_v35  ;;  %v1831_v25 = vrot.slane %v1829_v1, 4 }
 0x140   : > { %1485 = vst.msk [vmem:[#allocation2 + $0x2c] sm:$0x7] %vm1474_vm12, %v1447_v45  ;;  %v1282_v11 = vpop.permute.xlu0 %1281  ;;  %v1764_v45 = vld [vmem:[#allocation2 + $0x34] sm:$0x7]  ;;  %v1611_v47 = vrot.slane %v1609_v33, 4 }
 0x141   : > { %1332 = vst.msk [vmem:[#allocation2 + $0x30] sm:$0xf] %vm1305_vm15, %v1282_v11  ;;  %v1558_v11 = vrot.slane %v1556_v26, 5 }
 0x143   : > { %v1562_v15 = vor.u32 %v1561_v48, %v1558_v11  ;;  %v1748_v44 = vld [vmem:[#allocation2 + $0x14] sm:$0x7] }
 0x145   : > { %1006 = vrot.lane.b32.xlu1 %v968_v49, %s2311_s22  ;;  %1261 = vrot.lane.b32.xlu2 %v1137_v16, %s2313_s24  ;;  %v1563_v38 = vrot.slane %v1562_v15, 4 }
 0x146   : > { %998 = vrot.lane.b32.xlu0 %v964_v32, %s2311_s22  ;;  %v1600_v32 = vor.u32 %v1599_v29, %v1596_v59 }
 0x147   : > { %v1508_v3 = vld [vmem:[#allocation2 + $0x2c] sm:$0xc]  ;;  %v1272_v4 = vpop.permute.xlu2 %1271  ;;  %v1449_v42 = vpop.permute.xlu1 %1448 }
 0x148   : > { %v1509_v9 = vsel %vm3132_vm9, 0, %v1508_v3  ;;  %v1322_v22 = vsel %vm3070_vm10, %v1272_v4, %v1321_v8  ;;  %1486 = vst.msk [vmem:[#allocation2 + $0x30] sm:$0xf] %vm1472_vm14, %v1449_v42  ;;  %v1441_v62 = vpop.permute.xlu0 %1440  ;;  %v1601_v50 = vrot.slane %v1600_v32, 4  ;;  %v2205_v4 = vrot.slane %v1786_v60, 10 }
 0x149   : > { %1510 = vst [vmem:[#allocation2 + $0x2c] sm:$0xc] %v1509_v9  ;;  %v1821_v8 = vrot.slane %v1819_v35, 4 }
 0x14a   : > { %1323 = vst [vmem:[#allocation2 + $0x1c] sm:$0xf] %v1322_v22  ;;  %v1610_v0 = vsel %vm2919_vm7, %v1601_v50, %v1609_v33  ;;  %v1830_v30 = vsel %vm2537_vm1, %v2205_v4, %v1829_v1  ;;  %vm2108_vm1 = vcmask 60416  }
 0x14b   : > { %1763 = vst.msk [vmem:[#allocation2 + $0x30] sm:$0xf] %vm1736_vm5, %v3190_v27  ;;  %v1571_v27 = vor.u32 %v1570_v52, %v1567_v36 }
 0x14c   : > { %1344 = vst.msk [vmem:[#allocation2 + $0x1c] sm:$0x8] %vm1340_vm2, %v2309_v17 }
 0x14d   : > { %1482 = vst.msk [vmem:[#allocation2 + $0x20] sm:$0xf] %vm1472_vm14, %v1441_v62  ;;  %1428 = vrot.lane.b32.xlu1 %v1392_v23, %s2312_s23  ;;  %v1573_v49 = vrot.slane %v1571_v27, 4  ;;  %1436 = vrot.lane.b32.xlu2 %v1402_v54, %s2312_s23  ;;  %v1572_v37 = vsel %vm2919_vm7, %v1563_v38, %v1571_v27 }
 0x14e   : > { %1269 = vrot.lane.b32.xlu0 %v1175_v55, %s2313_s24  ;;  %1914 = vst.msk [vmem:[#allocation2 + $0x30] sm:$0xf] %vm1900_vm6, %v3211_v43 }
 0x14f   : > { %v3257_v31 = vpop.permute.xlu2 %1257  ;;  %v1705_v28 = vpop.permute.xlu1 %1704 }
 0x150   : > { %1755 = vst.msk [vmem:[#allocation2 + $0x20] sm:$0xf] %vm1736_vm5, %v1705_v28  ;;  %v1715_v41 = vpop.permute.xlu0 %1714  ;;  %v1768_v28 = vld [vmem:[#allocation2 + $0x3c] sm:$0x7]  ;;  %v1760_v46 = vld [vmem:[#allocation2 + $0x2c] sm:$0x7] }
 0x151   : > { %v1765_v43 = vsel %vm3180_vm13, %v1715_v41, %v1764_v45 }
 0x152   : > { %1766 = vst [vmem:[#allocation2 + $0x34] sm:$0x7] %v1765_v43 }
 0x153   : > { %1778 = vst.msk [vmem:[#allocation2 + $0x34] sm:$0xc] %vm1771_vm3, %v2309_v17 }
 0x155   : > { %1702 = vrot.lane.b32.xlu1 %v1611_v47, %s2314_s25  ;;  %1692 = vrot.lane.b32.xlu2 %v1572_v37, %s2314_s25 }
 0x156   : > { %1694 = vrot.lane.b32.xlu0 %v1573_v49, %s2314_s25 }
 0x157   : > { %v1439_v57 = vpop.permute.xlu2 %1438  ;;  %v1871_v53 = vpop.permute.xlu1 %1870 }
 0x158   : > { %1481 = vst.msk [vmem:[#allocation2 + $0x1c] sm:$0x7] %vm1474_vm12, %v1439_v57  ;;  %v1869_v61 = vpop.permute.xlu0 %1868 }
 0x159   : > { %1911 = vst.msk [vmem:[#allocation2 + $0x24] sm:$0x3] %vm1902_vm0, %v1871_v53 }
 0x15a   : > { %1910 = vst.msk [vmem:[#allocation2 + $0x20] sm:$0xf] %vm1900_vm6, %v1869_v61 }
 0x15d   : > { %1856 = vrot.lane.b32.xlu1 %v1820_v34, %s2315_s26  ;;  %1858 = vrot.lane.b32.xlu2 %v1821_v8, %s2315_s26 }
 0x15e   : > { %1700 = vrot.lane.b32.xlu0 %v1610_v0, %s2314_s25 }
 0x15f   : > { %v1502_v21 = vld [vmem:[#allocation2 + $0x1c] sm:$0xc]  ;;  %v1691_v7 = vpop.permute.xlu2 %1690  ;;  %v1264_v3 = vpop.permute.xlu1 %1263 }
 0x160   : > { %v1503_v42 = vsel %vm3132_vm9, 0, %v1502_v21  ;;  %v1741_v58 = vsel %vm3180_vm13, %v1691_v7, %v1740_v2  ;;  %v1879_v9 = vpop.permute.xlu0 %1878  ;;  %v1314_v22 = vsel %vm3070_vm10, %v1264_v3, %v1313_v12 }
 0x161   : > { %1504 = vst [vmem:[#allocation2 + $0x1c] sm:$0xc] %v1503_v42  ;;  %v2266_v62 = vld [vmem:[#allocation2 + $0x20] sm:$0xff] }
 0x162   : > { %1742 = vst [vmem:[#allocation2 + $0x4] sm:$0x7] %v1741_v58  ;;  %2254 = vmatmul.msk.bf16.vlgmr.msra.gmra.mxu2 %vm1994_vm4, %v2266_v62 }
 0x163   : > { %1772 = vst.msk [vmem:[#allocation2 + $0x4] sm:$0xc] %vm1771_vm3, %v2309_v17 }
 0x164   : > { %1315 = vst [vmem:[#allocation2 + $0xc] sm:$0xf] %v1314_v22 }
 0x165   : > { %1915 = vst.msk [vmem:[#allocation2 + $0x34] sm:$0x3] %vm1902_vm0, %v1879_v9  ;;  %1866 = vrot.lane.b32.xlu1 %v1831_v25, %s2315_s26 }
 0x166   : > { %1342 = vst.msk [vmem:[#allocation2 + $0xc] sm:$0x8] %vm1340_vm2, %v2309_v17  ;;  %1864 = vrot.lane.b32.xlu0 %v1830_v30, %s2315_s26 }
 0x167   : > { %v1697_v13 = vpop.permute.xlu2 %1696  ;;  %v1003_v10 = vpop.permute.xlu1 %1002 }
 0x168   : > { %1047 = vst.msk [vmem:[#allocation2 + $0x10] sm:$0xf] %vm1042_vm8, %v1003_v10  ;;  %v995_v6 = vpop.permute.xlu0 %994  ;;  %v1752_v21 = vld [vmem:[#allocation2 + $0x1c] sm:$0x7] }
 0x169   : > { %1043 = vst.msk [vmem:[#allocation2] sm:$0xf] %vm1042_vm8, %v995_v6 }
 0x16a   : > { %1306 = vst.msk [vmem:[#allocation2] sm:$0xf] %vm1305_vm15, %v3257_v31 }
 0x16c   : > { %v2268_v5 = vld [vmem:[#allocation2 + $0x30] sm:$0xff] }
 0x16d   : > { %2256 = vmatmul.msk.bf16.vlgmr.msra.gmra.mxu3 %vm1994_vm4, %v2268_v5 }
 0x16f   : > { %v1861_v19 = vpop.permute.xlu2 %1860  ;;  %v1431_v23 = vpop.permute.xlu1 %1430 }
 0x170   : > { %1477 = vst.msk [vmem:[#allocation2 + $0xc] sm:$0x7] %vm1474_vm12, %v1431_v23  ;;  %v1266_v36 = vpop.permute.xlu0 %1265 }
 0x171   : > { %1316 = vst.msk [vmem:[#allocation2 + $0x10] sm:$0xf] %vm1305_vm15, %v1266_v36 }
 0x177   : > { %v1496_v52 = vld [vmem:[#allocation2 + $0xc] sm:$0xc]  ;;  %v1023_v16 = vpop.permute.xlu2 %1022  ;;  %v1433_v55 = vpop.permute.xlu1 %1432 }
 0x178   : > { %v1497_v20 = vsel %vm3132_vm9, 0, %v1496_v52  ;;  %1057 = vst.msk [vmem:[#allocation2 + $0x38] sm:$0xf] %vm1042_vm8, %v1023_v16  ;;  %v1425_v51 = vpop.permute.xlu0 %1424 }
 0x179   : > { %1498 = vst [vmem:[#allocation2 + $0xc] sm:$0xc] %v1497_v20 }
 0x17a   : > { %1478 = vst.msk [vmem:[#allocation2 + $0x10] sm:$0xf] %vm1472_vm14, %v1433_v55 }
 0x17b   : > { %1747 = vst.msk [vmem:[#allocation2 + $0x10] sm:$0xf] %vm1736_vm5, %v1697_v13 }
 0x17c   : > { %1906 = vst.msk [vmem:[#allocation2 + $0x10] sm:$0xf] %vm1900_vm6, %v1861_v19 }
 0x17d   : > { %1473 = vst.msk [vmem:[#allocation2] sm:$0xf] %vm1472_vm14, %v1425_v51 }
 0x17f   : > { %v1445_v24 = vpop.permute.xlu2 %1444  ;;  %v1689_v33 = vpop.permute.xlu1 %1688 }
 0x180   : > { %1737 = vst.msk [vmem:[#allocation2] sm:$0xf] %vm1736_vm5, %v1689_v33  ;;  %v1699_v27 = vpop.permute.xlu0 %1698  ;;  %v1744_v3 = vld [vmem:[#allocation2 + $0xc] sm:$0x7] }
 0x181   : > { %v1749_v18 = vsel %vm3180_vm13, %v1699_v27, %v1748_v44 }
 0x182   : > { %1750 = vst [vmem:[#allocation2 + $0x14] sm:$0x7] %v1749_v18 }
 0x183   : > { %1774 = vst.msk [vmem:[#allocation2 + $0x14] sm:$0xc] %vm1771_vm3, %v2309_v17 }
 0x187   : > { %v1719_v31 = vpop.permute.xlu2 %1718  ;;  %v1855_v59 = vpop.permute.xlu1 %1854 }
 0x188   : > { %v1769_v29 = vsel %vm3180_vm13, %v1719_v31, %v1768_v28  ;;  %1903 = vst.msk [vmem:[#allocation2 + $0x4] sm:$0x3] %vm1902_vm0, %v1855_v59  ;;  %v1853_v26 = vpop.permute.xlu0 %1852 }
 0x189   : > { %1770 = vst [vmem:[#allocation2 + $0x3c] sm:$0x7] %v1769_v29 }
 0x18a   : > { %1779 = vst.msk [vmem:[#allocation2 + $0x3c] sm:$0xc] %vm1771_vm3, %v2309_v17 }
 0x18b   : > { %1901 = vst.msk [vmem:[#allocation2] sm:$0xf] %vm1900_vm6, %v1853_v26 }
 0x18f   : > { %v1015_v40 = vpop.permute.xlu1 %1014  ;;  %v1873_v41 = vpop.permute.xlu2 %1872 }
 0x190   : > { %1053 = vst.msk [vmem:[#allocation2 + $0x28] sm:$0xf] %vm1042_vm8, %v1015_v40  ;;  %v1863_v45 = vpop.permute.xlu0 %1862 }
 0x191   : > { %1907 = vst.msk [vmem:[#allocation2 + $0x14] sm:$0x3] %vm1902_vm0, %v1863_v45 }
 0x192   : > { %v2262_v54 = vld [vmem:[#allocation2] sm:$0xff] }
 0x193   : > { %2250 = vmatmul.msk.bf16.vlgmr.msra.gmra.mxu0 %vm1994_vm4, %v2262_v54 }
 0x197   : > { %v1286_v43 = vpop.permute.xlu1 %1285  ;;  %v1883_v48 = vpop.permute.xlu2 %1882 }
 0x198   : > { %1336 = vst.msk [vmem:[#allocation2 + $0x38] sm:$0xf] %vm1305_vm15, %v1286_v43  ;;  %v1278_v47 = vpop.permute.xlu0 %1277  ;;  %v2264_v11 = vld [vmem:[#allocation2 + $0x10] sm:$0xff] }
 0x199   : > { %1328 = vst.msk [vmem:[#allocation2 + $0x28] sm:$0xf] %vm1305_vm15, %v1278_v47  ;;  %2252 = vmatmul.msk.bf16.vlgmr.msra.gmra.mxu1 %vm1994_vm4, %v2264_v11 }
 0x19a   : > { %1484 = vst.msk [vmem:[#allocation2 + $0x28] sm:$0xf] %vm1472_vm14, %v1445_v24 }
 0x19b   : > { %1917 = vst.msk [vmem:[#allocation2 + $0x3c] sm:$0x3] %vm1902_vm0, %v1883_v48 }
 0x19f   : > { %v1711_v49 = vpop.permute.xlu1 %1710  ;;  %v1262_v14 = vpop.permute.xlu2 %1261 }
 0x1a0   : > { %v1761_v56 = vsel %vm3180_vm13, %v1711_v49, %v1760_v46  ;;  %v1453_v32 = vpop.permute.xlu0 %1452 }
 0x1a1   : > { %1762 = vst [vmem:[#allocation2 + $0x2c] sm:$0x7] %v1761_v56 }
 0x1a2   : > { %1777 = vst.msk [vmem:[#allocation2 + $0x2c] sm:$0xc] %vm1771_vm3, %v2309_v17 }
 0x1a3   : > { %1488 = vst.msk [vmem:[#allocation2 + $0x38] sm:$0xf] %vm1472_vm14, %v1453_v32 }
 0x1a7   : > { %v1717_v15 = vpop.permute.xlu1 %1716  ;;  %v1437_v53 = vpop.permute.xlu2 %1436 }
 0x1a8   : > { %1767 = vst.msk [vmem:[#allocation2 + $0x38] sm:$0xf] %vm1736_vm5, %v1717_v15  ;;  %v1709_v38 = vpop.permute.xlu0 %1708 }
 0x1a9   : > { %1759 = vst.msk [vmem:[#allocation2 + $0x28] sm:$0xf] %vm1736_vm5, %v1709_v38 }
 0x1aa   : > { %1912 = vst.msk [vmem:[#allocation2 + $0x28] sm:$0xf] %vm1900_vm6, %v1873_v41 }
 0x1af   : > { %v1881_v35 = vpop.permute.xlu1 %1880  ;;  %v1693_v60 = vpop.permute.xlu2 %1692 }
 0x1b0   : > { %1916 = vst.msk [vmem:[#allocation2 + $0x38] sm:$0xf] %vm1900_vm6, %v1881_v35  ;;  %v1875_v57 = vpop.permute.xlu0 %1874 }
 0x1b1   : > { %1913 = vst.msk [vmem:[#allocation2 + $0x2c] sm:$0x3] %vm1902_vm0, %v1875_v57 }
 0x1b7   : > { %v1007_v50 = vpop.permute.xlu1 %1006  ;;  %v2269_v61 = vld [vmem:[#allocation2 + $0x38] sm:$0xff]  ;;  %v1859_v8 = vpop.permute.xlu2 %1858 }
 0x1b8   : > { %1049 = vst.msk [vmem:[#allocation2 + $0x18] sm:$0xf] %vm1042_vm8, %v1007_v50  ;;  %v999_v37 = vpop.permute.xlu0 %998  ;;  %v2267_v34 = vld [vmem:[#allocation2 + $0x28] sm:$0xff]  ;;  %2257 = vmatmul.msk.bf16.gmra.mxu3 %vm1994_vm4, %v2269_v61 }
 0x1b9   : > { %1045 = vst.msk [vmem:[#allocation2 + $0x8] sm:$0xf] %vm1042_vm8, %v999_v37  ;;  %2255 = vmatmul.msk.bf16.gmra.mxu2 %vm1994_vm4, %v2267_v34 }
 0x1ba   : > { %1312 = vst.msk [vmem:[#allocation2 + $0x8] sm:$0xf] %vm1305_vm15, %v1262_v14 }
 0x1bf   : > { %v1429_v63 = vpop.permute.xlu1 %1428 }
 0x1c0   : > { %1476 = vst.msk [vmem:[#allocation2 + $0x8] sm:$0xf] %vm1472_vm14, %v1429_v63  ;;  %v1270_v0 = vpop.permute.xlu0 %1269 }
 0x1c1   : > { %1320 = vst.msk [vmem:[#allocation2 + $0x18] sm:$0xf] %vm1305_vm15, %v1270_v0 }
 0x1c2   : > { %1480 = vst.msk [vmem:[#allocation2 + $0x18] sm:$0xf] %vm1472_vm14, %v1437_v53 }
 0x1c3   : > { %1743 = vst.msk [vmem:[#allocation2 + $0x8] sm:$0xf] %vm1736_vm5, %v1693_v60 }
 0x1c7   : > { %v1703_v1 = vpop.permute.xlu1 %1702 }
 0x1c8   : > { %v1753_v7 = vsel %vm3180_vm13, %v1703_v1, %v1752_v21  ;;  %v1695_v2 = vpop.permute.xlu0 %1694 }
 0x1c9   : > { %1754 = vst [vmem:[#allocation2 + $0x1c] sm:$0x7] %v1753_v7  ;;  %v1745_v4 = vsel %vm3180_vm13, %v1695_v2, %v1744_v3 }
 0x1ca   : > { %1775 = vst.msk [vmem:[#allocation2 + $0x1c] sm:$0xc] %vm1771_vm3, %v2309_v17 }
 0x1cb   : > { %1746 = vst [vmem:[#allocation2 + $0xc] sm:$0x7] %v1745_v4 }
 0x1cc   : > { %1773 = vst.msk [vmem:[#allocation2 + $0xc] sm:$0xc] %vm1771_vm3, %v2309_v17  ;;  %v3374_v17 = vld [vmem:[%s3436_s2] ss:$0 sm:$0xff] }
 0x1cd   : > { %1905 = vst.msk [vmem:[#allocation2 + $0xc] sm:$0x3] %vm1902_vm0, %v1859_v8 }
 0x1cf   : > { %v1857_v42 = vpop.permute.xlu1 %1856 }
 0x1d0   : > { %1904 = vst.msk [vmem:[#allocation2 + $0x8] sm:$0xf] %vm1900_vm6, %v1857_v42  ;;  %v1701_v58 = vpop.permute.xlu0 %1700 }
 0x1d1   : > { %1751 = vst.msk [vmem:[#allocation2 + $0x18] sm:$0xf] %vm1736_vm5, %v1701_v58 }
 0x1d7   : > { %v1867_v12 = vpop.permute.xlu1 %1866  ;;  %v2263_v39 = vld [vmem:[#allocation2 + $0x8] sm:$0xff] }
 0x1d8   : > { %1909 = vst.msk [vmem:[#allocation2 + $0x1c] sm:$0x3] %vm1902_vm0, %v1867_v12  ;;  %v1865_v9 = vpop.permute.xlu0 %1864  ;;  %2251 = vmatmul.msk.bf16.gmra.mxu0 %vm1994_vm4, %v2263_v39 }
 0x1d9   : > { %1908 = vst.msk [vmem:[#allocation2 + $0x18] sm:$0xf] %vm1900_vm6, %v1865_v9 }
 0x1e0   : > { %v2265_v22 = vld [vmem:[#allocation2 + $0x18] sm:$0xff] }
 0x1e1   : > { %2253 = vmatmul.msk.bf16.gmra.mxu1 %vm1994_vm4, %v2265_v22 }
 0x1e5   : > { %v2052_v62 = vpop.f32.mrf.mxu2 }
 0x1e6   : > { %v2084_v25 = vadd.f32 %v3374_v17, %v2052_v62 }
 0x1e8   : > { %v2100_v30 = vpack.c.bf16 %v2084_v25, %v2084_v25 }
 0x1ea   : > { %2117 = vst.msk [vmem:[%s3382_s10 + $0x20] sm:$0xf] %vm2108_vm1, %v2100_v30 }
 0x1ed   : > { %v2054_v13 = vpop.f32.mrf.mxu2 }
 0x1ee   : > { %v2085_v10 = vadd.f32 %v3374_v17, %v2054_v13 }
 0x1f0   : > { %v2101_v6 = vpack.c.bf16 %v2085_v10, %v2085_v10  ;;  %v2062_v5 = vpop.f32.mrf.mxu3 }
 0x1f1   : > { %v2088_v19 = vadd.f32 %v3374_v17, %v2062_v5 }
 0x1f2   : > { %2118 = vst.msk [vmem:[%s3382_s10 + $0x24] sm:$0xf] %vm2108_vm1, %v2101_v6 }
 0x1f3   : > { %v2104_v23 = vpack.c.bf16 %v2088_v19, %v2088_v19 }
 0x1f5   : > { %2121 = vst.msk [vmem:[%s3382_s10 + $0x30] sm:$0xf] %vm2108_vm1, %v2104_v23 }
 0x1f8   : > { %v2064_v36 = vpop.f32.mrf.mxu3 }
 0x1f9   : > { %v2089_v52 = vadd.f32 %v3374_v17, %v2064_v36 }
 0x1fb   : > { %v2105_v16 = vpack.c.bf16 %v2089_v52, %v2089_v52 }
 0x1fd   : > { %2122 = vst.msk [vmem:[%s3382_s10 + $0x34] sm:$0xf] %vm2108_vm1, %v2105_v16 }
 0x210   : > { %v2032_v55 = vpop.f32.mrf.mxu0 }
 0x211   : > { %v2076_v20 = vadd.f32 %v3374_v17, %v2032_v55 }
 0x213   : > { %v2092_v51 = vpack.c.bf16 %v2076_v20, %v2076_v20 }
 0x215   : > { %2109 = vst.msk [vmem:[%s3382_s10] sm:$0xf] %vm2108_vm1, %v2092_v51 }
 0x216   : > { %v2042_v24 = vpop.f32.mrf.mxu1 }
 0x217   : > { %v2080_v33 = vadd.f32 %v3374_v17, %v2042_v24 }
 0x218   : > { %v2034_v27 = vpop.f32.mrf.mxu0 }
 0x219   : > { %v2077_v44 = vadd.f32 %v3374_v17, %v2034_v27  ;;  %v2096_v18 = vpack.c.bf16 %v2080_v33, %v2080_v33 }
 0x21b   : > { %v2093_v31 = vpack.c.bf16 %v2077_v44, %v2077_v44  ;;  %2113 = vst.msk [vmem:[%s3382_s10 + $0x10] sm:$0xf] %vm2108_vm1, %v2096_v18 }
 0x21d   : > { %2110 = vst.msk [vmem:[%s3382_s10 + $0x4] sm:$0xf] %vm2108_vm1, %v2093_v31 }
 0x21e   : > { %v2044_v28 = vpop.f32.mrf.mxu1 }
 0x21f   : > { %v2081_v59 = vadd.f32 %v3374_v17, %v2044_v28 }
 0x221   : > { %v2097_v29 = vpack.c.bf16 %v2081_v59, %v2081_v59 }
 0x223   : > { %2114 = vst.msk [vmem:[%s3382_s10 + $0x14] sm:$0xf] %vm2108_vm1, %v2097_v29 }
 0x23b   : > { %v2067_v26 = vpop.f32.mrf.mxu3 }
 0x23c   : > { %v2057_v40 = vpop.f32.mrf.mxu2  ;;  %v2090_v41 = vadd.f32 %v3374_v17, %v2067_v26 }
 0x23d   : > { %v2086_v45 = vadd.f32 %v3374_v17, %v2057_v40 }
 0x23e   : > { %v2106_v54 = vpack.c.bf16 %v2090_v41, %v2090_v41 }
 0x23f   : > { %v2102_v43 = vpack.c.bf16 %v2086_v45, %v2086_v45 }
 0x240   : > { %2123 = vst.msk [vmem:[%s3382_s10 + $0x38] sm:$0xf] %vm2108_vm1, %v2106_v54 }
 0x241   : > { %2119 = vst.msk [vmem:[%s3382_s10 + $0x28] sm:$0xf] %vm2108_vm1, %v2102_v43 }
 0x243   : > { %v2069_v47 = vpop.f32.mrf.mxu3 }
 0x244   : > { %v2059_v11 = vpop.f32.mrf.mxu2  ;;  %v2091_v48 = vadd.f32 %v3374_v17, %v2069_v47 }
 0x245   : > { %v2087_v49 = vadd.f32 %v3374_v17, %v2059_v11 }
 0x246   : > { %v2107_v46 = vpack.c.bf16 %v2091_v48, %v2091_v48 }
 0x247   : > { %v2103_v56 = vpack.c.bf16 %v2087_v49, %v2087_v49 }
 0x248   : > { %2124 = vst.msk [vmem:[%s3382_s10 + $0x3c] sm:$0xf] %vm2108_vm1, %v2107_v46 }
 0x249   : > { %2120 = vst.msk [vmem:[%s3382_s10 + $0x2c] sm:$0xf] %vm2108_vm1, %v2103_v56 }
 0x255   : > { %v2037_v32 = vpop.f32.mrf.mxu0 }
 0x256   : > { %v2078_v15 = vadd.f32 %v3374_v17, %v2037_v32 }
 0x258   : > { %v2094_v38 = vpack.c.bf16 %v2078_v15, %v2078_v15 }
 0x25a   : > { %2111 = vst.msk [vmem:[%s3382_s10 + $0x8] sm:$0xf] %vm2108_vm1, %v2094_v38 }
 0x25d   : > { %v2039_v14 = vpop.f32.mrf.mxu0 }
 0x25e   : > { %v2079_v35 = vadd.f32 %v3374_v17, %v2039_v14  ;;  %v2047_v57 = vpop.f32.mrf.mxu1 }
 0x25f   : > { %v2082_v53 = vadd.f32 %v3374_v17, %v2047_v57 }
 0x260   : > { %v2095_v50 = vpack.c.bf16 %v2079_v35, %v2079_v35 }
 0x261   : > { %v2098_v61 = vpack.c.bf16 %v2082_v53, %v2082_v53 }
 0x262   : > { %2112 = vst.msk [vmem:[%s3382_s10 + $0xc] sm:$0xf] %vm2108_vm1, %v2095_v50 }
 0x263   : > { %2115 = vst.msk [vmem:[%s3382_s10 + $0x18] sm:$0xf] %vm2108_vm1, %v2098_v61 }
 0x266   : > { %v2049_v37 = vpop.f32.mrf.mxu1 }
 0x267   : > { %v2083_v34 = vadd.f32 %v3374_v17, %v2049_v37 }
 0x269   : > { %v2099_v63 = vpack.c.bf16 %v2083_v34, %v2083_v34 }
 0x26b   : > { %2116 = vst.msk [vmem:[%s3382_s10 + $0x1c] sm:$0xf] %vm2108_vm1, %v2099_v63 }
 0x26c PF: > { %s13_s12 = sadd.s32 1, %s2305_s12  }
 0x26d   : > { %p10_p4 = scmp.ge.s32.totalorder %s13_s12, 6  }
 0x26f   :  { %12 = sbr.rel (!%p10_p4) target bundleno = 1 (0x1), region = 62 }

</bundles_post_ra>
